<compile_context>
chip_gen: v7x
topology: tpu7x:2x2x1
jax: 0.10.0
libtpu: 0.0.40
codegen_flags: <defaults>
</compile_context>

<pallas_src>
import jax
import jax.numpy as jnp
from jax.experimental import pallas as pl
from jax.experimental.pallas import tpu as pltpu

_IN = 10
_OUT = 784
_OUT_PAD = 896  # 7 * 128 : lane-dense output width


def _round_up(x, m):
    return ((x + m - 1) // m) * m


def _attacker_mlp_kernel(x_ref,
                         w1_ref, b1_ref,
                         w2_ref, b2_ref,
                         w3_ref, b3_ref,
                         w4_ref, b4_ref,
                         o_ref):
    # fc1 + relu  (bf16 operands, f32 accumulate)
    h = jnp.dot(x_ref[...].astype(jnp.bfloat16), w1_ref[...],
                preferred_element_type=jnp.float32)
    h = jnp.maximum(h + b1_ref[...], 0.0)
    # fc2 + relu
    h = jnp.dot(h.astype(jnp.bfloat16), w2_ref[...],
                preferred_element_type=jnp.float32)
    h = jnp.maximum(h + b2_ref[...], 0.0)
    # fc3 + relu
    h = jnp.dot(h.astype(jnp.bfloat16), w3_ref[...],
                preferred_element_type=jnp.float32)
    h = jnp.maximum(h + b3_ref[...], 0.0)
    # fc4 + sigmoid (output padded to 896 lanes; extra cols sliced off outside)
    h = jnp.dot(h.astype(jnp.bfloat16), w4_ref[...],
                preferred_element_type=jnp.float32)
    h = h + b4_ref[...]
    e = jnp.exp(-h)                                   # EUP
    o_ref[...] = pl.reciprocal(1.0 + e, approx=True).astype(o_ref.dtype)


def attacker_model_forward(x, params, *, tm=256):
    """x: (B, 10) float32 -> (B, 1, 28, 28) float32, matching the PyTorch module."""
    (w1, b1), (w2, b2), (w3, b3), (w4, b4) = params
    B = x.shape[0]

    # Weights as bf16 (MXU-native on all generations); biases stay f32.
    w1b = w1.astype(jnp.bfloat16)
    w2b = w2.astype(jnp.bfloat16)
    w3b = w3.astype(jnp.bfloat16)
    pad_n = _OUT_PAD - _OUT
    w4b = jnp.pad(w4, ((0, 0), (0, pad_n))).astype(jnp.bfloat16)
    b4p = jnp.pad(b4, ((0, 0), (0, pad_n)))

    # Batch tiling: TM multiple of 8, pad B up to a multiple of TM.
    tm = min(tm, _round_up(B, 8))
    bp = _round_up(B, tm)
    xp = jnp.pad(x, ((0, bp - B), (0, 0))) if bp != B else x
    grid = (bp // tm,)

    resident = lambda i: (0, 0)   # weights/biases: same block every grid step

    out = pl.pallas_call(
        _attacker_mlp_kernel,
        out_shape=jax.ShapeDtypeStruct((bp, _OUT_PAD), jnp.float32),
        grid_spec=pltpu.PrefetchScalarGridSpec(
            num_scalar_prefetch=0,
            grid=grid,
            in_specs=[
                pl.BlockSpec((tm, _IN), lambda i: (i, 0)),
                pl.BlockSpec((_IN, 128), resident),
                pl.BlockSpec((1, 128), resident),
                pl.BlockSpec((128, 256), resident),
                pl.BlockSpec((1, 256), resident),
                pl.BlockSpec((256, 512), resident),
                pl.BlockSpec((1, 512), resident),
                pl.BlockSpec((512, _OUT_PAD), resident),
                pl.BlockSpec((1, _OUT_PAD), resident),
            ],
            out_specs=pl.BlockSpec((tm, _OUT_PAD), lambda i: (i, 0)),
        ),
        compiler_params=pltpu.CompilerParams(
            dimension_semantics=("parallel",),
        ),
    )(xp, w1b, b1, w2b, b2, w3b, b3, w4b, b4p)

    # Glue: drop batch padding + padded lanes, then PyTorch's .view(-1, 1, 28, 28)
    return out[:B, :_OUT].reshape(-1, 1, 28, 28)


def init_params(key):
    """Deterministic init mirroring nn.Linear shapes (stored as (in, out)), f32."""
    sizes = [(10, 128), (128, 256), (256, 512), (512, 784)]
    params = []
    for i, (fan_in, fan_out) in enumerate(sizes):
        kw, kb = jax.random.split(jax.random.fold_in(key, i))
        bound = 1.0 / (fan_in ** 0.5)  # PyTorch default Linear init range
        w = jax.random.uniform(kw, (fan_in, fan_out), jnp.float32, -bound, bound)
        b = jax.random.uniform(kb, (1, fan_out), jnp.float32, -bound, bound)
        params.append((w, b))
    return params


def reference_forward(x, params):
    """Pure-JAX f32 reference for correctness checking."""
    h = x
    for i, (w, b) in enumerate(params):
        h = h @ w + b
        h = jnp.maximum(h, 0.0) if i < 3 else jax.nn.sigmoid(h)
    return h.reshape(-1, 1, 28, 28)


if __name__ == "__main__":
    key = jax.random.PRNGKey(0)
    k_x, k_p = jax.random.split(key)

    B = 8  # small batch; sublane-friendly
    x = jax.random.normal(k_x, (B, _IN), jnp.float32)
    params = init_params(k_p)

    y = attacker_model_forward(x, params)
    y = jax.block_until_ready(y)

    assert y.shape == (B, 1, 28, 28), y.shape
    y_ref = reference_forward(x, params)
    # bf16 matmul operands + approx reciprocal -> compare to f32 ref with a
    # tolerance generous for bf16 (sigmoid output is bounded in [0, 1]).
    assert jnp.allclose(y, y_ref, atol=2e-2, rtol=2e-2), float(jnp.max(jnp.abs(y - y_ref)))

    print("KERNEL_OK")
</pallas_src>

<mosaic_0001>
module attributes {stable_mosaic.version = 11 : i64} {
  func.func @_attacker_mlp_kernel(%arg0: i32, %arg1: memref<8x10xf32, #tpu.memory_space<vmem>>, %arg2: memref<10x128xbf16, #tpu.memory_space<vmem>>, %arg3: memref<1x128xf32, #tpu.memory_space<vmem>>, %arg4: memref<128x256xbf16, #tpu.memory_space<vmem>>, %arg5: memref<1x256xf32, #tpu.memory_space<vmem>>, %arg6: memref<256x512xbf16, #tpu.memory_space<vmem>>, %arg7: memref<1x512xf32, #tpu.memory_space<vmem>>, %arg8: memref<512x896xbf16, #tpu.memory_space<vmem>>, %arg9: memref<1x896xf32, #tpu.memory_space<vmem>>, %arg10: memref<8x896xf32, #tpu.memory_space<vmem>>) attributes {dimension_semantics = [#tpu.dimension_semantics<parallel>], iteration_bounds = array<i64: 1>, scalar_prefetch = 0 : i64, scratch_operands = 0 : i64, tpu.core_type = #tpu.core_type<tc>, window_params = [{transform_indices = @transform_0, window_bounds = array<i64: 8, 10>}, {pipeline_mode = #tpu.pipeline_mode<synchronous>, transform_indices = @transform_1, window_bounds = array<i64: 10, 128>}, {pipeline_mode = #tpu.pipeline_mode<synchronous>, transform_indices = @transform_2, window_bounds = array<i64: 1, 128>}, {pipeline_mode = #tpu.pipeline_mode<synchronous>, transform_indices = @transform_3, window_bounds = array<i64: 128, 256>}, {pipeline_mode = #tpu.pipeline_mode<synchronous>, transform_indices = @transform_4, window_bounds = array<i64: 1, 256>}, {pipeline_mode = #tpu.pipeline_mode<synchronous>, transform_indices = @transform_5, window_bounds = array<i64: 256, 512>}, {pipeline_mode = #tpu.pipeline_mode<synchronous>, transform_indices = @transform_6, window_bounds = array<i64: 1, 512>}, {pipeline_mode = #tpu.pipeline_mode<synchronous>, transform_indices = @transform_7, window_bounds = array<i64: 512, 896>}, {pipeline_mode = #tpu.pipeline_mode<synchronous>, transform_indices = @transform_8, window_bounds = array<i64: 1, 896>}, {transform_indices = @transform_9, window_bounds = array<i64: 8, 896>}]} {
    %c0 = arith.constant 0 : index
    %c0_0 = arith.constant 0 : index
    %0 = vector.load %arg1[%c0, %c0_0] : memref<8x10xf32, #tpu.memory_space<vmem>>, vector<8x10xf32>
    %1 = arith.truncf %0 : vector<8x10xf32> to vector<8x10xbf16>
    %c0_1 = arith.constant 0 : index
    %c0_2 = arith.constant 0 : index
    %2 = vector.load %arg2[%c0_1, %c0_2] : memref<10x128xbf16, #tpu.memory_space<vmem>>, vector<10x128xbf16>
    %cst = arith.constant dense<0.000000e+00> : vector<8x128xf32>
    %3 = tpu.matmul %1, %2, %cst {dimension_numbers = #tpu.dot_dimension_numbers<[1], [0], [0], [1], [0, 0, 1, 1], [], []>} : vector<8x10xbf16>, vector<10x128xbf16>, vector<8x128xf32> -> vector<8x128xf32>
    %c0_3 = arith.constant 0 : index
    %c0_4 = arith.constant 0 : index
    %4 = vector.load %arg3[%c0_3, %c0_4] : memref<1x128xf32, #tpu.memory_space<vmem>>, vector<1x128xf32>
    %5 = vector.broadcast %4 : vector<1x128xf32> to vector<8x128xf32>
    %6 = arith.addf %3, %5 : vector<8x128xf32>
    %cst_5 = arith.constant 0.000000e+00 : f32
    %7 = vector.broadcast %cst_5 : f32 to vector<8x128xf32>
    %8 = arith.maximumf %6, %7 : vector<8x128xf32>
    %9 = arith.truncf %8 : vector<8x128xf32> to vector<8x128xbf16>
    %c0_6 = arith.constant 0 : index
    %c0_7 = arith.constant 0 : index
    %10 = vector.load %arg4[%c0_6, %c0_7] : memref<128x256xbf16, #tpu.memory_space<vmem>>, vector<128x256xbf16>
    %cst_8 = arith.constant dense<0.000000e+00> : vector<8x256xf32>
    %11 = tpu.matmul %9, %10, %cst_8 {dimension_numbers = #tpu.dot_dimension_numbers<[1], [0], [0], [1], [0, 0, 1, 1], [], []>} : vector<8x128xbf16>, vector<128x256xbf16>, vector<8x256xf32> -> vector<8x256xf32>
    %c0_9 = arith.constant 0 : index
    %c0_10 = arith.constant 0 : index
    %12 = vector.load %arg5[%c0_9, %c0_10] : memref<1x256xf32, #tpu.memory_space<vmem>>, vector<1x256xf32>
    %13 = vector.broadcast %12 : vector<1x256xf32> to vector<8x256xf32>
    %14 = arith.addf %11, %13 : vector<8x256xf32>
    %cst_11 = arith.constant 0.000000e+00 : f32
    %15 = vector.broadcast %cst_11 : f32 to vector<8x256xf32>
    %16 = arith.maximumf %14, %15 : vector<8x256xf32>
    %17 = arith.truncf %16 : vector<8x256xf32> to vector<8x256xbf16>
    %c0_12 = arith.constant 0 : index
    %c0_13 = arith.constant 0 : index
    %18 = vector.load %arg6[%c0_12, %c0_13] : memref<256x512xbf16, #tpu.memory_space<vmem>>, vector<256x512xbf16>
    %cst_14 = arith.constant dense<0.000000e+00> : vector<8x512xf32>
    %19 = tpu.matmul %17, %18, %cst_14 {dimension_numbers = #tpu.dot_dimension_numbers<[1], [0], [0], [1], [0, 0, 1, 1], [], []>} : vector<8x256xbf16>, vector<256x512xbf16>, vector<8x512xf32> -> vector<8x512xf32>
    %c0_15 = arith.constant 0 : index
    %c0_16 = arith.constant 0 : index
    %20 = vector.load %arg7[%c0_15, %c0_16] : memref<1x512xf32, #tpu.memory_space<vmem>>, vector<1x512xf32>
    %21 = vector.broadcast %20 : vector<1x512xf32> to vector<8x512xf32>
    %22 = arith.addf %19, %21 : vector<8x512xf32>
    %cst_17 = arith.constant 0.000000e+00 : f32
    %23 = vector.broadcast %cst_17 : f32 to vector<8x512xf32>
    %24 = arith.maximumf %22, %23 : vector<8x512xf32>
    %25 = arith.truncf %24 : vector<8x512xf32> to vector<8x512xbf16>
    %c0_18 = arith.constant 0 : index
    %c0_19 = arith.constant 0 : index
    %26 = vector.load %arg8[%c0_18, %c0_19] : memref<512x896xbf16, #tpu.memory_space<vmem>>, vector<512x896xbf16>
    %cst_20 = arith.constant dense<0.000000e+00> : vector<8x896xf32>
    %27 = tpu.matmul %25, %26, %cst_20 {dimension_numbers = #tpu.dot_dimension_numbers<[1], [0], [0], [1], [0, 0, 1, 1], [], []>} : vector<8x512xbf16>, vector<512x896xbf16>, vector<8x896xf32> -> vector<8x896xf32>
    %c0_21 = arith.constant 0 : index
    %c0_22 = arith.constant 0 : index
    %28 = vector.load %arg9[%c0_21, %c0_22] : memref<1x896xf32, #tpu.memory_space<vmem>>, vector<1x896xf32>
    %29 = vector.broadcast %28 : vector<1x896xf32> to vector<8x896xf32>
    %30 = arith.addf %27, %29 : vector<8x896xf32>
    %cst_23 = arith.constant 0.000000e+00 : f32
    %31 = vector.broadcast %cst_23 : f32 to vector<8x896xf32>
    %32 = arith.subf %31, %30 : vector<8x896xf32>
    %33 = math.exp %32 : vector<8x896xf32>
    %cst_24 = arith.constant 1.000000e+00 : f32
    %34 = vector.broadcast %cst_24 : f32 to vector<8x896xf32>
    %35 = arith.addf %34, %33 : vector<8x896xf32>
    %36 = tpu.reciprocal %35 {approx = true} : vector<8x896xf32> -> vector<8x896xf32>
    %c0_25 = arith.constant 0 : index
    %c0_26 = arith.constant 0 : index
    %37 = vector.load %arg10[%c0_25, %c0_26] : memref<8x896xf32, #tpu.memory_space<vmem>>, vector<8x896xf32>
    tpu.vector_store %arg10[%c0_25, %c0_26], %36 {strides = array<i32>} : memref<8x896xf32, #tpu.memory_space<vmem>>, vector<8x896xf32>,
    return
  }
  func.func @transform_0(%arg0: i32) -> (i32, i32) {
    %c0_i32 = arith.constant 0 : i32
    %c0_i32_0 = arith.constant 0 : i32
    return %arg0, %c0_i32 : i32, i32
  }
  func.func @transform_1(%arg0: i32) -> (i32, i32) {
    %c0_i32 = arith.constant 0 : i32
    %c0_i32_0 = arith.constant 0 : i32
    %c0_i32_1 = arith.constant 0 : i32
    return %c0_i32, %c0_i32_0 : i32, i32
  }
  func.func @transform_2(%arg0: i32) -> (i32, i32) {
    %c0_i32 = arith.constant 0 : i32
    %c0_i32_0 = arith.constant 0 : i32
    %c0_i32_1 = arith.constant 0 : i32
    return %c0_i32, %c0_i32_0 : i32, i32
  }
  func.func @transform_3(%arg0: i32) -> (i32, i32) {
    %c0_i32 = arith.constant 0 : i32
    %c0_i32_0 = arith.constant 0 : i32
    %c0_i32_1 = arith.constant 0 : i32
    return %c0_i32, %c0_i32_0 : i32, i32
  }
  func.func @transform_4(%arg0: i32) -> (i32, i32) {
    %c0_i32 = arith.constant 0 : i32
    %c0_i32_0 = arith.constant 0 : i32
    %c0_i32_1 = arith.constant 0 : i32
    return %c0_i32, %c0_i32_0 : i32, i32
  }
  func.func @transform_5(%arg0: i32) -> (i32, i32) {
    %c0_i32 = arith.constant 0 : i32
    %c0_i32_0 = arith.constant 0 : i32
    %c0_i32_1 = arith.constant 0 : i32
    return %c0_i32, %c0_i32_0 : i32, i32
  }
  func.func @transform_6(%arg0: i32) -> (i32, i32) {
    %c0_i32 = arith.constant 0 : i32
    %c0_i32_0 = arith.constant 0 : i32
    %c0_i32_1 = arith.constant 0 : i32
    return %c0_i32, %c0_i32_0 : i32, i32
  }
  func.func @transform_7(%arg0: i32) -> (i32, i32) {
    %c0_i32 = arith.constant 0 : i32
    %c0_i32_0 = arith.constant 0 : i32
    %c0_i32_1 = arith.constant 0 : i32
    return %c0_i32, %c0_i32_0 : i32, i32
  }
  func.func @transform_8(%arg0: i32) -> (i32, i32) {
    %c0_i32 = arith.constant 0 : i32
    %c0_i32_0 = arith.constant 0 : i32
    %c0_i32_1 = arith.constant 0 : i32
    return %c0_i32, %c0_i32_0 : i32, i32
  }
  func.func @transform_9(%arg0: i32) -> (i32, i32) {
    %c0_i32 = arith.constant 0 : i32
    %c0_i32_0 = arith.constant 0 : i32
    return %arg0, %c0_i32 : i32, i32
  }
}

</mosaic_0001>

<bundles_post_ra>
// kernel: tpu_custom_call.1
= control target key start
LH: loop header
LB: loop body
LE: loop exit
PB: predicated region body
PF: predicated region fallthrough
CT: control target
= control target key end

     0   :  { %14 = vsyncpa [#allocation3], 0  ;;  %s3875_s0 = inlined_call_operand.hbm [shape: f32[8,10], index: 0, kind: input, shape index: {}]   ;;  %s3876_s1 = inlined_call_operand.hbm [shape: bf16[10,128], index: 1, kind: input, shape index: {}]   ;;  %s3877_s2 = inlined_call_operand.vmem [shape: f32[1,128], index: 2, kind: input, shape index: {}]   ;;  %s3878_s3 = inlined_call_operand.hbm [shape: bf16[128,256], index: 3, kind: input, shape index: {}]   ;;  %s3879_s4 = inlined_call_operand.vmem [shape: f32[1,256], index: 4, kind: input, shape index: {}]   ;;  %s3880_s5 = inlined_call_operand.hbm [shape: bf16[256,512], index: 5, kind: input, shape index: {}]   ;;  %s3881_s6 = inlined_call_operand.vmem [shape: f32[1,512], index: 6, kind: input, shape index: {}]   ;;  %s3882_s7 = inlined_call_operand.hbm [shape: bf16[512,896], index: 7, kind: input, shape index: {}]   ;;  %s3883_s8 = inlined_call_operand.vmem [shape: f32[1,896], index: 8, kind: input, shape index: {}]   ;;  %s3884_s9 = inlined_call_operand.hbm [shape: f32[8,896], index: 9, kind: output, shape index: {}]  }
   0x1   :  { %15 = vsyncpa [#allocation6], 0 }
   0x2   :  { %16 = vsyncpa [#allocation9], 0 }
   0x3   :  { %17 = vsyncpa [#allocation4], 0  ;;  %s3648_s30 = smov [#allocation5]   ;;  %s3508_s13 = scalar_lea.hbm %s3876_s1, 128 }
   0x4   :  { %s33_s10 = sshll.u32 %s3648_s30, 4  ;;  %p3509_p0 = scmp.ne.s32.totalorder %s3876_s1, %s3508_s13  ;;  %s34_s10 = int_to_ptr.vmem [resolvable:$true] %s33_s10 }
   0x5   :  { %p3512_p1 = scmp.lt.u32.totalorder %s3508_s13, %s3876_s1 }
   0x7   :  { %p3514_p2 = pnand %p3512_p1, %p3509_p0 }
   0x9   :  { %3517 = shalt.err (!%p3514_p2)
}
   0xa   :  { %s3518_s18 = scalar_lea.vmem %s34_s10, 128  ;;  %p3523_p4 = scmp.lt.s32.totalorder %s34_s10, %s34_s10 }
   0xb   :  { %p3519_p3 = scmp.ne.s32.totalorder %s34_s10, %s3518_s18  ;;  %p3524_p5 = scmp.lt.s32.totalorder %s3518_s18, %s3518_s18 }
   0xd   :  { %p3525_p6 = por %p3524_p5, %p3523_p4 }
   0xf   :  { %p3526_p7 = pnand %p3525_p6, %p3519_p3 }
  0x11   :  { %3529 = shalt.err (!%p3526_p7)
}
  0x12   :  { %s3649_s19 = smov 64   ;;  %s3650_s20 = smov 4  }
  0x13   :  { %39 = dma.hbm_to_vmem [thread:$0]  %s3876_s1, 128, %s34_s10, [#allocation6], %s3649_s19, %s3649_s19, %s3650_s20  }
  0x14   :  { %s3651_s23 = smov [#allocation8]   ;;  %s3530_s27 = scalar_lea.hbm %s3880_s5, 8192 }
  0x15   :  { %s61_s24 = sshll.u32 %s3651_s23, 4  ;;  %p3531_p8 = scmp.ne.s32.totalorder %s3880_s5, %s3530_s27  ;;  %s62_s24 = int_to_ptr.vmem [resolvable:$true] %s61_s24 }
  0x16   :  { %p3534_p9 = scmp.lt.u32.totalorder %s3530_s27, %s3880_s5 }
  0x18   :  { %p3536_p10 = pnand %p3534_p9, %p3531_p8 }
  0x1a   :  { %3539 = shalt.err (!%p3536_p10)
}
  0x1b   :  { %s3540_s12 = scalar_lea.vmem %s62_s24, 8192  ;;  %p3545_p12 = scmp.lt.s32.totalorder %s62_s24, %s62_s24 }
  0x1c   :  { %p3541_p11 = scmp.ne.s32.totalorder %s62_s24, %s3540_s12  ;;  %p3546_p13 = scmp.lt.s32.totalorder %s3540_s12, %s3540_s12 }
  0x1e   :  { %p3547_p0 = por %p3546_p13, %p3545_p12 }
  0x20   :  { %p3548_p1 = pnand %p3547_p0, %p3541_p11 }
  0x22   :  { %3551 = shalt.err (!%p3548_p1)
}
  0x23   :  { %s3652_s1 = smov 256   ;;  %s3653_s10 = smov 16  }
  0x24   :  { %67 = dma.hbm_to_vmem [thread:$0]  %s3880_s5, 8192, %s62_s24, [#allocation9], %s3652_s1, %s3652_s1, %s3653_s10  }
  0x25   :  { %s3654_s15 = smov [#allocation2]   ;;  %s3655_s17 = smov [#allocation7]  }
  0x26   :  { %s24_s16 = sshll.u32 %s3654_s15, 4  ;;  %s47_s18 = sshll.u32 %s3655_s17, 4  ;;  %s25_s16 = int_to_ptr.vmem [resolvable:$true] %s24_s16  ;;  %s3739_s18 = int_to_ptr.vmem [resolvable:$true] %s47_s18 }
  0x27   :  { %s3552_s21 = scalar_lea.hbm %s3875_s0, 128 }
  0x28   :  { %p3553_p2 = scmp.ne.s32.totalorder %s3875_s0, %s3552_s21  ;;  %p3556_p3 = scmp.lt.u32.totalorder %s3552_s21, %s3875_s0 }
  0x2a   :  { %p3558_p4 = pnand %p3556_p3, %p3553_p2 }
  0x2c   :  { %3561 = shalt.err (!%p3558_p4)
}
  0x2d   :  { %s3562_s5 = scalar_lea.vmem %s25_s16, 128  ;;  %p3567_p6 = scmp.lt.s32.totalorder %s25_s16, %s25_s16 }
  0x2e   :  { %p3563_p5 = scmp.ne.s32.totalorder %s25_s16, %s3562_s5  ;;  %p3568_p7 = scmp.lt.s32.totalorder %s3562_s5, %s3562_s5 }
  0x30   :  { %p3569_p8 = por %p3568_p7, %p3567_p6 }
  0x32   :  { %p3570_p9 = pnand %p3569_p8, %p3563_p5 }
  0x34   :  { %3573 = shalt.err (!%p3570_p9)
}
  0x35   :  { %27 = dma.hbm_to_vmem [thread:$0]  %s3875_s0, 128, %s25_s16, [#allocation3]  }
  0x36   :  { %s3574_s30 = scalar_lea.hbm %s3878_s3, 2048 }
  0x37   :  { %p3575_p10 = scmp.ne.s32.totalorder %s3878_s3, %s3574_s30  ;;  %p3578_p11 = scmp.lt.u32.totalorder %s3574_s30, %s3878_s3 }
  0x39   :  { %p3580_p12 = pnand %p3578_p11, %p3575_p10 }
  0x3b   :  { %3583 = shalt.err (!%p3580_p12)
}
  0x3c   :  { %s3584_s13 = scalar_lea.vmem %s3739_s18, 2048  ;;  %p3589_p0 = scmp.lt.s32.totalorder %s3739_s18, %s3739_s18 }
  0x3d   :  { %p3585_p13 = scmp.ne.s32.totalorder %s3739_s18, %s3584_s13  ;;  %p3590_p1 = scmp.lt.s32.totalorder %s3584_s13, %s3584_s13 }
  0x3f   :  { %p3591_p2 = por %p3590_p1, %p3589_p0 }
  0x41   :  { %p3592_p3 = pnand %p3591_p2, %p3585_p13 }
  0x43   :  { %3595 = shalt.err (!%p3592_p3)
}
  0x44   :  { %s3656_s0 = smov 128   ;;  %s3657_s14 = smov 8  }
  0x45   :  { %53 = dma.hbm_to_vmem [thread:$0]  %s3878_s3, 2048, %s3739_s18, [#allocation6], %s3656_s0, %s3656_s0, %s3657_s14  }
  0x46   :  { %s3658_s17 = smov [#allocation10]   ;;  %s3596_s22 = scalar_lea.hbm %s3882_s7, 28672 }
  0x47   :  { %s75_s19 = sshll.u32 %s3658_s17, 4  ;;  %p3597_p4 = scmp.ne.s32.totalorder %s3882_s7, %s3596_s22  ;;  %s76_s19 = int_to_ptr.vmem [resolvable:$true] %s75_s19 }
  0x48   :  { %p3600_p5 = scmp.lt.u32.totalorder %s3596_s22, %s3882_s7 }
  0x4a   :  { %p3602_p6 = pnand %p3600_p5, %p3597_p4 }
  0x4c   :  { %3605 = shalt.err (!%p3602_p6)
}
  0x4d   :  { %s3606_s24 = scalar_lea.vmem %s76_s19, 28672  ;;  %p3611_p8 = scmp.lt.s32.totalorder %s76_s19, %s76_s19 }
  0x4e   :  { %p3607_p7 = scmp.ne.s32.totalorder %s76_s19, %s3606_s24  ;;  %p3612_p9 = scmp.lt.s32.totalorder %s3606_s24, %s3606_s24 }
  0x50   :  { %p3613_p10 = por %p3612_p9, %p3611_p8 }
  0x52   :  { %p3614_p11 = pnand %p3613_p10, %p3607_p7 }
  0x54   :  { %3617 = shalt.err (!%p3614_p11)
}
  0x55   :  { %s3659_s3 = smov 448   ;;  %s3660_s18 = smov 28  }
  0x56   :  { %81 = dma.hbm_to_vmem [thread:$0]  %s3882_s7, 28672, %s76_s19, [#allocation9], %s3659_s3, %s3659_s3, %s3660_s18  }
  0x57   :  { %3640 = dma.done.wait [#allocation3], 128  }
  0x58   :  { %3641 = vsyncadd [#allocation3], 4294967168 }
  0x59   :  { %3642 = dma.done.wait [#allocation6], 2176  }
  0x5a   :  { %3643 = vsyncadd [#allocation6], 4294965120 }
  0x5b   :  { %3644 = dma.done.wait [#allocation9], 36864  }
  0x5c   :  { %3645 = vsyncadd [#allocation9], 4294930432  ;;  %v3661_v0 = vmov 0.0   ;;  %vm3662_vm0 = vmmov 0   ;;  %vm120_vm1 = vcmask 1044480   ;;  %v100_v2 = vld [vmem:[#allocation2] sm:$0xff] }
  0x5d   :  { %2998 = vmatprep.subr.bf16.mxu1 %v3661_v0  ;;  %3000 = vmatprep.mubr.msk.bf16.mxu1 %vm3662_vm0, %v3661_v0  ;;  %v3039_v1 = vld [vmem:[#allocation5] sm:$0x1f]   ;;  %v101_v4 = vpack.c.bf16 %v100_v2, %v100_v2  ;;  %v3042_v5 = vld [vmem:[#allocation7 + $0x4] ss:$8 sps:$4 sm:$0xff]   ;;  %vm116_vm2 = vcmask 80896   ;;  %v3663_v21 = vmov 0  }
  0x5e   :  { %v122_v3 = vsel %vm120_vm1, %v3039_v1, 0  ;;  %v3040_v6 = vld [vmem:[#allocation7] ss:$8 sps:$4 sm:$0xff]   ;;  %v3045_v7 = vld [vmem:[#allocation7 + $0x14] ss:$8 sps:$4 sm:$0xff]  }
  0x5f   :  { %2999 = vmatpush3.bf16.msra.mxu1 %v122_v3  ;;  %v3043_v8 = vld [vmem:[#allocation7 + $0x10] ss:$8 sps:$4 sm:$0xff]   ;;  %v3048_v9 = vld [vmem:[#allocation7 + $0x24] ss:$8 sps:$4 sm:$0xff]   ;;  %v3046_v10 = vld [vmem:[#allocation7 + $0x20] ss:$8 sps:$4 sm:$0xff]  }
  0x60   :  { %274 = vmatprep.subr.bf16.mxu1 %v3042_v5  ;;  %v3051_v11 = vld [vmem:[#allocation7 + $0x34] ss:$8 sps:$4 sm:$0xff]   ;;  %v3049_v12 = vld [vmem:[#allocation7 + $0x30] ss:$8 sps:$4 sm:$0xff]   ;;  %v3054_v13 = vld [vmem:[#allocation7 + $0x44] ss:$8 sps:$4 sm:$0xff]  }
  0x61   :  { %v3052_v14 = vld [vmem:[#allocation7 + $0x40] ss:$8 sps:$4 sm:$0xff]   ;;  %v3057_v15 = vld [vmem:[#allocation7 + $0x54] ss:$8 sps:$4 sm:$0xff]   ;;  %v3055_v16 = vld [vmem:[#allocation7 + $0x50] ss:$8 sps:$4 sm:$0xff]  }
  0x62   :  { %3001 = vmatmul.mubr.msk.bf16.vlgmr.msra.gmra.mrb[0].mxu1 %vm116_vm2, %v101_v4  ;;  %v3060_v17 = vld [vmem:[#allocation7 + $0x64] ss:$8 sps:$4 sm:$0xff]   ;;  %v3058_v18 = vld [vmem:[#allocation7 + $0x60] ss:$8 sps:$4 sm:$0xff]   ;;  %v3063_v19 = vld [vmem:[#allocation7 + $0x74] ss:$8 sps:$4 sm:$0xff]  }
  0x63   :  { %275 = vmatpush1.bf16.msra.mxu1 %v3040_v6  ;;  %v3061_v20 = vld [vmem:[#allocation7 + $0x70] ss:$8 sps:$4 sm:$0xff]   ;;  %306 = vmatprep.mubr.bf16.mxu1 %v3663_v21  ;;  %v3064_v22 = vld [vmem:[#allocation8 + $0x4] ss:$16 sps:$4 sm:$0xff]   ;;  %v3068_v23 = vld [vmem:[#allocation8 + $0xc] ss:$16 sps:$4 sm:$0xff]  }
  0x64   :  { %276 = vmatprep.subr.bf16.mxu1 %v3045_v7  ;;  %v3069_v24 = vld [vmem:[#allocation8] ss:$16 sps:$4 sm:$0xff]   ;;  %v3070_v25 = vld [vmem:[#allocation8 + $0x24] ss:$16 sps:$4 sm:$0xff]   ;;  %725 = vmatprep.subr.bf16.mxu0 %v3064_v22  ;;  %v3066_v58 = vld [vmem:[#allocation8 + $0x8] ss:$16 sps:$4 sm:$0xff]  }
  0x65   :  { %v3075_v26 = vld [vmem:[#allocation8 + $0x20] ss:$16 sps:$4 sm:$0xff]   ;;  %726 = vmatpush1.bf16.msra.mxu0 %v3069_v24  ;;  %v3076_v27 = vld [vmem:[#allocation8 + $0x44] ss:$16 sps:$4 sm:$0xff]   ;;  %v3074_v60 = vld [vmem:[#allocation8 + $0x2c] ss:$16 sps:$4 sm:$0xff]  }
  0x66   :  { %727 = vmatprep.subr.bf16.mxu0 %v3070_v25  ;;  %v3081_v28 = vld [vmem:[#allocation8 + $0x40] ss:$16 sps:$4 sm:$0xff]   ;;  %v3082_v29 = vld [vmem:[#allocation8 + $0x64] ss:$16 sps:$4 sm:$0xff]   ;;  %v3072_v61 = vld [vmem:[#allocation8 + $0x28] ss:$16 sps:$4 sm:$0xff]  }
  0x67   :  { %277 = vmatpush1.bf16.msra.mxu1 %v3043_v8  ;;  %v3087_v30 = vld [vmem:[#allocation8 + $0x60] ss:$16 sps:$4 sm:$0xff]   ;;  %v3088_v31 = vld [vmem:[#allocation8 + $0x84] ss:$16 sps:$4 sm:$0xff]   ;;  %v3080_v62 = vld [vmem:[#allocation8 + $0x4c] ss:$16 sps:$4 sm:$0xff]  }
  0x68   :  { %278 = vmatprep.subr.bf16.mxu1 %v3048_v9  ;;  %v3093_v32 = vld [vmem:[#allocation8 + $0x80] ss:$16 sps:$4 sm:$0xff]   ;;  %v3094_v33 = vld [vmem:[#allocation8 + $0xa4] ss:$16 sps:$4 sm:$0xff]   ;;  %v3078_v63 = vld [vmem:[#allocation8 + $0x48] ss:$16 sps:$4 sm:$0xff]  }
  0x69   :  { %728 = vmatpush1.bf16.msra.mxu0 %v3075_v26  ;;  %v3099_v34 = vld [vmem:[#allocation8 + $0xa0] ss:$16 sps:$4 sm:$0xff]   ;;  %v3100_v35 = vld [vmem:[#allocation8 + $0xc4] ss:$16 sps:$4 sm:$0xff]   ;;  %v3086_v0 = vld [vmem:[#allocation8 + $0x6c] ss:$16 sps:$4 sm:$0xff]  }
  0x6a   :  { %729 = vmatprep.subr.bf16.mxu0 %v3076_v27  ;;  %v3105_v36 = vld [vmem:[#allocation8 + $0xc0] ss:$16 sps:$4 sm:$0xff]   ;;  %v3106_v37 = vld [vmem:[#allocation8 + $0xe4] ss:$16 sps:$4 sm:$0xff]   ;;  %v3084_v1 = vld [vmem:[#allocation8 + $0x68] ss:$16 sps:$4 sm:$0xff]  }
  0x6b   :  { %279 = vmatpush1.bf16.msra.mxu1 %v3046_v10  ;;  %v3111_v38 = vld [vmem:[#allocation8 + $0xe0] ss:$16 sps:$4 sm:$0xff]   ;;  %v3112_v39 = vld [vmem:[#allocation8 + $0x104] ss:$16 sps:$4 sm:$0xff]   ;;  %v3092_v2 = vld [vmem:[#allocation8 + $0x8c] ss:$16 sps:$4 sm:$0xff]  }
  0x6c   :  { %280 = vmatprep.subr.bf16.mxu1 %v3051_v11  ;;  %v3117_v40 = vld [vmem:[#allocation8 + $0x100] ss:$16 sps:$4 sm:$0xff]   ;;  %v3118_v41 = vld [vmem:[#allocation8 + $0x124] ss:$16 sps:$4 sm:$0xff]   ;;  %v3090_v3 = vld [vmem:[#allocation8 + $0x88] ss:$16 sps:$4 sm:$0xff]  }
  0x6d   :  { %730 = vmatpush1.bf16.msra.mxu0 %v3081_v28  ;;  %v3123_v42 = vld [vmem:[#allocation8 + $0x120] ss:$16 sps:$4 sm:$0xff]   ;;  %v3124_v43 = vld [vmem:[#allocation8 + $0x144] ss:$16 sps:$4 sm:$0xff]   ;;  %v3098_v4 = vld [vmem:[#allocation8 + $0xac] ss:$16 sps:$4 sm:$0xff]  }
  0x6e   :  { %731 = vmatprep.subr.bf16.mxu0 %v3082_v29  ;;  %v3129_v44 = vld [vmem:[#allocation8 + $0x140] ss:$16 sps:$4 sm:$0xff]   ;;  %v3130_v45 = vld [vmem:[#allocation8 + $0x164] ss:$16 sps:$4 sm:$0xff]   ;;  %v3096_v5 = vld [vmem:[#allocation8 + $0xa8] ss:$16 sps:$4 sm:$0xff]  }
  0x6f   :  { %281 = vmatpush1.bf16.msra.mxu1 %v3049_v12  ;;  %v3135_v46 = vld [vmem:[#allocation8 + $0x160] ss:$16 sps:$4 sm:$0xff]   ;;  %v3136_v47 = vld [vmem:[#allocation8 + $0x184] ss:$16 sps:$4 sm:$0xff]   ;;  %v3104_v6 = vld [vmem:[#allocation8 + $0xcc] ss:$16 sps:$4 sm:$0xff]  }
  0x70   :  { %282 = vmatprep.subr.bf16.mxu1 %v3054_v13  ;;  %v3141_v48 = vld [vmem:[#allocation8 + $0x180] ss:$16 sps:$4 sm:$0xff]   ;;  %v3142_v49 = vld [vmem:[#allocation8 + $0x1a4] ss:$16 sps:$4 sm:$0xff]   ;;  %v3102_v7 = vld [vmem:[#allocation8 + $0xc8] ss:$16 sps:$4 sm:$0xff]  }
  0x71   :  { %732 = vmatpush1.bf16.msra.mxu0 %v3087_v30  ;;  %v3147_v50 = vld [vmem:[#allocation8 + $0x1a0] ss:$16 sps:$4 sm:$0xff]   ;;  %v3110_v8 = vld [vmem:[#allocation8 + $0xec] ss:$16 sps:$4 sm:$0xff]   ;;  %v3108_v9 = vld [vmem:[#allocation8 + $0xe8] ss:$16 sps:$4 sm:$0xff]  }
  0x72   :  { %733 = vmatprep.subr.bf16.mxu0 %v3088_v31  ;;  %v2645_v51 = vld [vmem:[%s3877_s2] ss:$0 sm:$0xff]  ;;  %v3116_v10 = vld [vmem:[#allocation8 + $0x10c] ss:$16 sps:$4 sm:$0xff]   ;;  %v3114_v11 = vld [vmem:[#allocation8 + $0x108] ss:$16 sps:$4 sm:$0xff]  }
  0x73   :  { %283 = vmatpush1.bf16.msra.mxu1 %v3052_v14  ;;  %v3122_v12 = vld [vmem:[#allocation8 + $0x12c] ss:$16 sps:$4 sm:$0xff]   ;;  %v3120_v13 = vld [vmem:[#allocation8 + $0x128] ss:$16 sps:$4 sm:$0xff]   ;;  %v3148_v22 = vld [vmem:[#allocation8 + $0x1c4] ss:$16 sps:$4 sm:$0xff]  }
  0x74   :  { %284 = vmatprep.subr.bf16.mxu1 %v3057_v15  ;;  %v3128_v14 = vld [vmem:[#allocation8 + $0x14c] ss:$16 sps:$4 sm:$0xff]   ;;  %v3126_v15 = vld [vmem:[#allocation8 + $0x148] ss:$16 sps:$4 sm:$0xff]   ;;  %v3153_v25 = vld [vmem:[#allocation8 + $0x1c0] ss:$16 sps:$4 sm:$0xff]  }
  0x75   :  { %734 = vmatpush1.bf16.msra.mxu0 %v3093_v32  ;;  %v3144_v21 = vld [vmem:[#allocation8 + $0x1a8] ss:$16 sps:$4 sm:$0xff]   ;;  %v3154_v26 = vld [vmem:[#allocation8 + $0x1e4] ss:$16 sps:$4 sm:$0xff]   ;;  %v3158_v27 = vld [vmem:[#allocation8 + $0x1ec] ss:$16 sps:$4 sm:$0xff]   ;;  %v184_v32 = vlaneseq }
  0x76   :  { %735 = vmatprep.subr.bf16.mxu0 %v3094_v33  ;;  %v3150_v24 = vld [vmem:[#allocation8 + $0x1c8] ss:$16 sps:$4 sm:$0xff]   ;;  %v3159_v29 = vld [vmem:[#allocation8 + $0x1e0] ss:$16 sps:$4 sm:$0xff]  }
  0x77   :  { %285 = vmatpush1.bf16.msra.mxu1 %v3055_v16  ;;  %v3134_v16 = vld [vmem:[#allocation8 + $0x16c] ss:$16 sps:$4 sm:$0xff]   ;;  %v3156_v28 = vld [vmem:[#allocation8 + $0x1e8] ss:$16 sps:$4 sm:$0xff]   ;;  %v3162_v30 = vld [vmem:[#allocation10 + $0x4] ss:$28 sps:$4 sm:$0xff]  }
  0x78   :  { %286 = vmatprep.subr.bf16.mxu1 %v3060_v17  ;;  %v3132_v17 = vld [vmem:[#allocation8 + $0x168] ss:$16 sps:$4 sm:$0xff]   ;;  %v3785_v33 = vshrl.u32 %v184_v32, 7 }
  0x79   :  { %736 = vmatpush1.bf16.msra.mxu0 %v3099_v34  ;;  %v3165_v31 = vld [vmem:[#allocation10 + $0xc] ss:$28 sps:$4 sm:$0xff]  }
  0x7a   :  { %737 = vmatprep.subr.bf16.mxu0 %v3100_v35  ;;  %v3788_v34 = vsub.s32 0, %v3785_v33  ;;  %v182_v35 = vld [vmem:[%s3879_s4] sm:$0x3]  ;;  %v3237_v32 = vld [vmem:[#allocation10 + $0x2ac] ss:$28 sps:$4 sm:$0xff]  }
  0x7b   :  { %287 = vmatpush1.bf16.msra.mxu1 %v3058_v18  ;;  %v3140_v18 = vld [vmem:[#allocation8 + $0x18c] ss:$16 sps:$4 sm:$0xff]  }
  0x7c   :  { %288 = vmatprep.subr.bf16.mxu1 %v3063_v19  ;;  %v3138_v19 = vld [vmem:[#allocation8 + $0x188] ss:$16 sps:$4 sm:$0xff]  }
  0x7d   :  { %738 = vmatpush1.bf16.msra.mxu0 %v3105_v36  ;;  %v3794_v36 = vsub.s32 1, %v3785_v33 }
  0x7e   :  { %739 = vmatprep.subr.bf16.mxu0 %v3106_v37  ;;  %v187_v37 = vrot.slane %v182_v35, %v3788_v34 }
  0x7f   :  { %289 = vmatpush1.bf16.msra.mxu1 %v3061_v20  ;;  %v3146_v20 = vld [vmem:[#allocation8 + $0x1ac] ss:$16 sps:$4 sm:$0xff]  }
  0x80   :  { %766 = vmatprep.subr.bf16.mxu1 %v3068_v23  ;;  %v3152_v23 = vld [vmem:[#allocation8 + $0x1cc] ss:$16 sps:$4 sm:$0xff]  }
  0x81   :  { %740 = vmatpush1.bf16.msra.mxu0 %v3111_v38  ;;  %v191_v38 = vrot.slane %v182_v35, %v3794_v36  ;;  %v3232_v35 = vld [vmem:[#allocation10 + $0x2a0] ss:$28 sps:$4 sm:$0xff]  }
  0x82   :  { %741 = vmatprep.subr.bf16.mxu0 %v3112_v39 }
  0x85   :  { %742 = vmatpush1.bf16.msra.mxu0 %v3117_v40 }
  0x86   :  { %743 = vmatprep.subr.bf16.mxu0 %v3118_v41 }
  0x89   :  { %744 = vmatpush1.bf16.msra.mxu0 %v3123_v42 }
  0x8a   :  { %745 = vmatprep.subr.bf16.mxu0 %v3124_v43 }
  0x8d   :  { %746 = vmatpush1.bf16.msra.mxu0 %v3129_v44 }
  0x8e   :  { %747 = vmatprep.subr.bf16.mxu0 %v3130_v45 }
  0x91   :  { %748 = vmatpush1.bf16.msra.mxu0 %v3135_v46 }
  0x92   :  { %749 = vmatprep.subr.bf16.mxu0 %v3136_v47 }
  0x95   :  { %750 = vmatpush1.bf16.msra.mxu0 %v3141_v48  ;;  %v3160_v48 = vld [vmem:[#allocation10] ss:$28 sps:$4 sm:$0xff]  }
  0x96   :  { %751 = vmatprep.subr.bf16.mxu0 %v3142_v49  ;;  %v3163_v49 = vld [vmem:[#allocation10 + $0x8] ss:$28 sps:$4 sm:$0xff]  }
  0x99   :  { %752 = vmatpush1.bf16.msra.mxu0 %v3147_v50 }
  0x9a   :  { %753 = vmatprep.subr.bf16.mxu0 %v3148_v22  ;;  %v3217_v22 = vld [vmem:[#allocation10 + $0x200] ss:$28 sps:$4 sm:$0xff]  }
  0x9d   :  { %754 = vmatpush1.bf16.msra.mxu0 %v3153_v25  ;;  %v3220_v25 = vld [vmem:[#allocation10 + $0x230] ss:$28 sps:$4 sm:$0xff]  }
  0x9e   :  { %755 = vmatprep.subr.bf16.mxu0 %v3154_v26  ;;  %v3223_v26 = vld [vmem:[#allocation10 + $0x238] ss:$28 sps:$4 sm:$0xff]  }
  0xa1   :  { %756 = vmatpush1.bf16.msra.mxu0 %v3159_v29  ;;  %v3226_v29 = vld [vmem:[#allocation10 + $0x268] ss:$28 sps:$4 sm:$0xff]  }
  0xa2   :  { %2260 = vmatprep.subr.bf16.mxu0 %v3162_v30  ;;  %v3229_v30 = vld [vmem:[#allocation10 + $0x270] ss:$28 sps:$4 sm:$0xff]  }
 0x135   :  { %v158_v52 = vpop.f32.mrb[0].mxu1 }
 0x136   :  { %v159_v53 = vadd.f32 %v2645_v51, %v158_v52  ;;  %v3002_v54 = vpop.f32.mrb[1].mxu1  ;;  %v3168_v51 = vld [vmem:[#allocation10 + $0x3c] ss:$28 sps:$4 sm:$0xff]   ;;  %v3171_v52 = vld [vmem:[#allocation10 + $0x44] ss:$28 sps:$4 sm:$0xff]  }
 0x137   :  { %v161_v55 = vpop.f32.mrb[2].mxu1  ;;  %v3169_v54 = vld [vmem:[#allocation10 + $0x40] ss:$28 sps:$4 sm:$0xff]  }
 0x138   :  { %v164_v56 = vmax.f32 %v159_v53, 0.0  ;;  %v3003_v57 = vpop.f32.mrb[3].mxu1  ;;  %v3166_v53 = vld [vmem:[#allocation10 + $0x38] ss:$28 sps:$4 sm:$0xff]  }
 0x139   :  { %v3174_v55 = vld [vmem:[#allocation10 + $0x74] ss:$28 sps:$4 sm:$0xff]  }
 0x13a   :  { %v165_v59 = vpack.c.bf16 %v164_v56, %v164_v56  ;;  %v3177_v56 = vld [vmem:[#allocation10 + $0x7c] ss:$28 sps:$4 sm:$0xff]   ;;  %v3172_v57 = vld [vmem:[#allocation10 + $0x70] ss:$28 sps:$4 sm:$0xff]  }
 0x13c   :  { %307 = vmatmul.mubr.bf16.vlgmr.msra.gmra.mrb[4].mxu1 %v165_v59  ;;  %v3180_v59 = vld [vmem:[#allocation10 + $0xac] ss:$28 sps:$4 sm:$0xff]  }
 0x13d   :  { %767 = vmatpush1.bf16.msra.mxu1 %v3066_v58  ;;  %v3175_v58 = vld [vmem:[#allocation10 + $0x78] ss:$28 sps:$4 sm:$0xff]  }
 0x13e   :  { %768 = vmatprep.subr.bf16.mxu1 %v3074_v60  ;;  %v3183_v60 = vld [vmem:[#allocation10 + $0xb4] ss:$28 sps:$4 sm:$0xff]  }
 0x141   :  { %769 = vmatpush1.bf16.msra.mxu1 %v3072_v61  ;;  %v3178_v61 = vld [vmem:[#allocation10 + $0xa8] ss:$28 sps:$4 sm:$0xff]  }
 0x142   :  { %770 = vmatprep.subr.bf16.mxu1 %v3080_v62  ;;  %v3181_v62 = vld [vmem:[#allocation10 + $0xb0] ss:$28 sps:$4 sm:$0xff]  }
 0x145   :  { %771 = vmatpush1.bf16.msra.mxu1 %v3078_v63  ;;  %v3186_v63 = vld [vmem:[#allocation10 + $0xe4] ss:$28 sps:$4 sm:$0xff]  }
 0x146   :  { %772 = vmatprep.subr.bf16.mxu1 %v3086_v0  ;;  %v3189_v0 = vld [vmem:[#allocation10 + $0xec] ss:$28 sps:$4 sm:$0xff]  }
 0x149   :  { %773 = vmatpush1.bf16.msra.mxu1 %v3084_v1  ;;  %v3184_v1 = vld [vmem:[#allocation10 + $0xe0] ss:$28 sps:$4 sm:$0xff]  }
 0x14a   :  { %774 = vmatprep.subr.bf16.mxu1 %v3092_v2  ;;  %v3187_v2 = vld [vmem:[#allocation10 + $0xe8] ss:$28 sps:$4 sm:$0xff]  }
 0x14d   :  { %775 = vmatpush1.bf16.msra.mxu1 %v3090_v3  ;;  %v3192_v3 = vld [vmem:[#allocation10 + $0x11c] ss:$28 sps:$4 sm:$0xff]  }
 0x14e   :  { %776 = vmatprep.subr.bf16.mxu1 %v3098_v4  ;;  %v3195_v4 = vld [vmem:[#allocation10 + $0x124] ss:$28 sps:$4 sm:$0xff]  }
 0x151   :  { %777 = vmatpush1.bf16.msra.mxu1 %v3096_v5  ;;  %v3190_v5 = vld [vmem:[#allocation10 + $0x118] ss:$28 sps:$4 sm:$0xff]  }
 0x152   :  { %778 = vmatprep.subr.bf16.mxu1 %v3104_v6  ;;  %v3193_v6 = vld [vmem:[#allocation10 + $0x120] ss:$28 sps:$4 sm:$0xff]  }
 0x155   :  { %779 = vmatpush1.bf16.msra.mxu1 %v3102_v7  ;;  %v3198_v7 = vld [vmem:[#allocation10 + $0x154] ss:$28 sps:$4 sm:$0xff]  }
 0x156   :  { %780 = vmatprep.subr.bf16.mxu1 %v3110_v8  ;;  %v3201_v8 = vld [vmem:[#allocation10 + $0x15c] ss:$28 sps:$4 sm:$0xff]  }
 0x159   :  { %781 = vmatpush1.bf16.msra.mxu1 %v3108_v9  ;;  %v3196_v9 = vld [vmem:[#allocation10 + $0x150] ss:$28 sps:$4 sm:$0xff]  }
 0x15a   :  { %782 = vmatprep.subr.bf16.mxu1 %v3116_v10  ;;  %v3199_v10 = vld [vmem:[#allocation10 + $0x158] ss:$28 sps:$4 sm:$0xff]  }
 0x15d   :  { %783 = vmatpush1.bf16.msra.mxu1 %v3114_v11  ;;  %v3204_v11 = vld [vmem:[#allocation10 + $0x18c] ss:$28 sps:$4 sm:$0xff]  }
 0x15e   :  { %784 = vmatprep.subr.bf16.mxu1 %v3122_v12  ;;  %v3207_v12 = vld [vmem:[#allocation10 + $0x194] ss:$28 sps:$4 sm:$0xff]  }
 0x161   :  { %785 = vmatpush1.bf16.msra.mxu1 %v3120_v13  ;;  %v3202_v13 = vld [vmem:[#allocation10 + $0x188] ss:$28 sps:$4 sm:$0xff]  }
 0x162   :  { %786 = vmatprep.subr.bf16.mxu1 %v3128_v14  ;;  %v3205_v14 = vld [vmem:[#allocation10 + $0x190] ss:$28 sps:$4 sm:$0xff]  }
 0x165   :  { %787 = vmatpush1.bf16.msra.mxu1 %v3126_v15  ;;  %v3210_v15 = vld [vmem:[#allocation10 + $0x1c4] ss:$28 sps:$4 sm:$0xff]  }
 0x166   :  { %788 = vmatprep.subr.bf16.mxu1 %v3134_v16  ;;  %v3213_v16 = vld [vmem:[#allocation10 + $0x1cc] ss:$28 sps:$4 sm:$0xff]  }
 0x169   :  { %789 = vmatpush1.bf16.msra.mxu1 %v3132_v17  ;;  %v3208_v17 = vld [vmem:[#allocation10 + $0x1c0] ss:$28 sps:$4 sm:$0xff]  }
 0x16a   :  { %790 = vmatprep.subr.bf16.mxu1 %v3140_v18  ;;  %v3211_v18 = vld [vmem:[#allocation10 + $0x1c8] ss:$28 sps:$4 sm:$0xff]  }
 0x16d   :  { %791 = vmatpush1.bf16.msra.mxu1 %v3138_v19  ;;  %v3216_v19 = vld [vmem:[#allocation10 + $0x1fc] ss:$28 sps:$4 sm:$0xff]  }
 0x16e   :  { %792 = vmatprep.subr.bf16.mxu1 %v3146_v20  ;;  %v3219_v20 = vld [vmem:[#allocation10 + $0x204] ss:$28 sps:$4 sm:$0xff]  }
 0x171   :  { %793 = vmatpush1.bf16.msra.mxu1 %v3144_v21  ;;  %v3214_v21 = vld [vmem:[#allocation10 + $0x1f8] ss:$28 sps:$4 sm:$0xff]  }
 0x172   :  { %794 = vmatprep.subr.bf16.mxu1 %v3152_v23  ;;  %v3222_v23 = vld [vmem:[#allocation10 + $0x234] ss:$28 sps:$4 sm:$0xff]  }
 0x175   :  { %795 = vmatpush1.bf16.msra.mxu1 %v3150_v24  ;;  %v3225_v24 = vld [vmem:[#allocation10 + $0x23c] ss:$28 sps:$4 sm:$0xff]  }
 0x176   :  { %796 = vmatprep.subr.bf16.mxu1 %v3158_v27  ;;  %v3228_v27 = vld [vmem:[#allocation10 + $0x26c] ss:$28 sps:$4 sm:$0xff]  }
 0x179   :  { %797 = vmatpush1.bf16.msra.mxu1 %v3156_v28  ;;  %v3231_v28 = vld [vmem:[#allocation10 + $0x274] ss:$28 sps:$4 sm:$0xff]  }
 0x17a   :  { %2342 = vmatprep.subr.bf16.mxu1 %v3165_v31  ;;  %v3234_v31 = vld [vmem:[#allocation10 + $0x2a4] ss:$28 sps:$4 sm:$0xff]  }
 0x20f   :  { %v308_v39 = vpop.f32.mrb[4].mxu1 }
 0x210   :  { %v309_v40 = vadd.f32 %v308_v39, %v187_v37  ;;  %v310_v41 = vpop.f32.mrb[5].mxu1  ;;  %v3235_v37 = vld [vmem:[#allocation10 + $0x2a8] ss:$28 sps:$4 sm:$0xff]  }
 0x211   :  { %v311_v42 = vadd.f32 %v310_v41, %v191_v38  ;;  %v312_v43 = vpop.f32.mrb[6].mxu1  ;;  %v3240_v38 = vld [vmem:[#allocation10 + $0x2dc] ss:$28 sps:$4 sm:$0xff]   ;;  %v3243_v39 = vld [vmem:[#allocation10 + $0x2e4] ss:$28 sps:$4 sm:$0xff]  }
 0x212   :  { %v315_v44 = vmax.f32 %v309_v40, 0.0  ;;  %v313_v45 = vpop.f32.mrb[7].mxu1  ;;  %v3238_v40 = vld [vmem:[#allocation10 + $0x2d8] ss:$28 sps:$4 sm:$0xff]   ;;  %v3241_v41 = vld [vmem:[#allocation10 + $0x2e0] ss:$28 sps:$4 sm:$0xff]  }
 0x213   :  { %v316_v46 = vmax.f32 %v311_v42, 0.0  ;;  %v3246_v42 = vld [vmem:[#allocation10 + $0x314] ss:$28 sps:$4 sm:$0xff]   ;;  %v3249_v43 = vld [vmem:[#allocation10 + $0x31c] ss:$28 sps:$4 sm:$0xff]  }
 0x214   :  { %v317_v50 = vpack.c.bf16 %v315_v44, %v315_v44  ;;  %v3244_v44 = vld [vmem:[#allocation10 + $0x310] ss:$28 sps:$4 sm:$0xff]   ;;  %v3247_v45 = vld [vmem:[#allocation10 + $0x318] ss:$28 sps:$4 sm:$0xff]  }
 0x215   :  { %v318_v47 = vpack.c.bf16 %v316_v46, %v316_v46  ;;  %v3252_v46 = vld [vmem:[#allocation10 + $0x34c] ss:$28 sps:$4 sm:$0xff]  }
 0x217   :  { %757 = vmatprep.mubr.bf16.mxu0 %v318_v47  ;;  %798 = vmatprep.mubr.bf16.mxu1 %v318_v47  ;;  %v3255_v47 = vld [vmem:[#allocation10 + $0x354] ss:$28 sps:$4 sm:$0xff]  }
 0x218   :  { %758 = vmatmul.mubr.bf16.vlgmr.msra.gmra.mrb[0].mxu0 %v317_v50  ;;  %799 = vmatmul.mubr.bf16.vlgmr.msra.gmra.mrb[8].mxu1 %v317_v50  ;;  %v3258_v50 = vld [vmem:[#allocation10 + $0x384] ss:$28 sps:$4 sm:$0xff]  }
 0x219   :  { %2261 = vmatpush1.bf16.msra.mxu0 %v3160_v48  ;;  %2343 = vmatpush1.bf16.msra.mxu1 %v3163_v49  ;;  %v3250_v48 = vld [vmem:[#allocation10 + $0x348] ss:$28 sps:$4 sm:$0xff]   ;;  %v3253_v49 = vld [vmem:[#allocation10 + $0x350] ss:$28 sps:$4 sm:$0xff]  }
 0x21a   :  { %2262 = vmatprep.subr.bf16.mxu0 %v3168_v51  ;;  %2344 = vmatprep.subr.bf16.mxu1 %v3171_v52  ;;  %v3261_v51 = vld [vmem:[#allocation10 + $0x38c] ss:$28 sps:$4 sm:$0xff]   ;;  %v3801_v52 = vld [vmem:[%s3881_s6] sm:$0xf] }
 0x21d   :  { %2263 = vmatpush1.bf16.msra.mxu0 %v3166_v53  ;;  %2345 = vmatpush1.bf16.msra.mxu1 %v3169_v54  ;;  %v399_v53 = vsub.s32 3, %v3785_v33  ;;  %v388_v54 = vrot.slane %v3801_v52, %v3788_v34 }
 0x21e   :  { %2264 = vmatprep.subr.bf16.mxu0 %v3174_v55  ;;  %2346 = vmatprep.subr.bf16.mxu1 %v3177_v56  ;;  %v392_v55 = vrot.slane %v3801_v52, %v3794_v36 }
 0x21f   :  { %v400_v56 = vrot.slane %v3801_v52, %v399_v53 }
 0x221   :  { %2265 = vmatpush1.bf16.msra.mxu0 %v3172_v57  ;;  %2347 = vmatpush1.bf16.msra.mxu1 %v3175_v58 }
 0x222   :  { %2266 = vmatprep.subr.bf16.mxu0 %v3180_v59  ;;  %2348 = vmatprep.subr.bf16.mxu1 %v3183_v60 }
 0x225   :  { %2267 = vmatpush1.bf16.msra.mxu0 %v3178_v61  ;;  %2349 = vmatpush1.bf16.msra.mxu1 %v3181_v62 }
 0x226   :  { %2268 = vmatprep.subr.bf16.mxu0 %v3186_v63  ;;  %2350 = vmatprep.subr.bf16.mxu1 %v3189_v0 }
 0x229   :  { %2269 = vmatpush1.bf16.msra.mxu0 %v3184_v1  ;;  %2351 = vmatpush1.bf16.msra.mxu1 %v3187_v2 }
 0x22a   :  { %2270 = vmatprep.subr.bf16.mxu0 %v3192_v3  ;;  %2352 = vmatprep.subr.bf16.mxu1 %v3195_v4 }
 0x22d   :  { %2271 = vmatpush1.bf16.msra.mxu0 %v3190_v5  ;;  %2353 = vmatpush1.bf16.msra.mxu1 %v3193_v6 }
 0x22e   :  { %2272 = vmatprep.subr.bf16.mxu0 %v3198_v7  ;;  %2354 = vmatprep.subr.bf16.mxu1 %v3201_v8  ;;  %v3256_v8 = vld [vmem:[#allocation10 + $0x380] ss:$28 sps:$4 sm:$0xff]  }
 0x231   :  { %2273 = vmatpush1.bf16.msra.mxu0 %v3196_v9  ;;  %2355 = vmatpush1.bf16.msra.mxu1 %v3199_v10  ;;  %v3259_v9 = vld [vmem:[#allocation10 + $0x388] ss:$28 sps:$4 sm:$0xff]  }
 0x232   :  { %2274 = vmatprep.subr.bf16.mxu0 %v3204_v11  ;;  %2356 = vmatprep.subr.bf16.mxu1 %v3207_v12  ;;  %v3264_v11 = vld [vmem:[#allocation10 + $0x3bc] ss:$28 sps:$4 sm:$0xff]   ;;  %v3267_v12 = vld [vmem:[#allocation10 + $0x3c4] ss:$28 sps:$4 sm:$0xff]  }
 0x235   :  { %2275 = vmatpush1.bf16.msra.mxu0 %v3202_v13  ;;  %2357 = vmatpush1.bf16.msra.mxu1 %v3205_v14  ;;  %v3262_v14 = vld [vmem:[#allocation10 + $0x3b8] ss:$28 sps:$4 sm:$0xff]  }
 0x236   :  { %2276 = vmatprep.subr.bf16.mxu0 %v3210_v15  ;;  %2358 = vmatprep.subr.bf16.mxu1 %v3213_v16  ;;  %v3265_v15 = vld [vmem:[#allocation10 + $0x3c0] ss:$28 sps:$4 sm:$0xff]   ;;  %v3270_v16 = vld [vmem:[#allocation10 + $0x3f4] ss:$28 sps:$4 sm:$0xff]  }
 0x239   :  { %2277 = vmatpush1.bf16.msra.mxu0 %v3208_v17  ;;  %2359 = vmatpush1.bf16.msra.mxu1 %v3211_v18  ;;  %v3273_v17 = vld [vmem:[#allocation10 + $0x3fc] ss:$28 sps:$4 sm:$0xff]   ;;  %v3268_v18 = vld [vmem:[#allocation10 + $0x3f0] ss:$28 sps:$4 sm:$0xff]  }
 0x23a   :  { %2278 = vmatprep.subr.bf16.mxu0 %v3216_v19  ;;  %2360 = vmatprep.subr.bf16.mxu1 %v3219_v20  ;;  %v3271_v19 = vld [vmem:[#allocation10 + $0x3f8] ss:$28 sps:$4 sm:$0xff]   ;;  %v3276_v20 = vld [vmem:[#allocation10 + $0x42c] ss:$28 sps:$4 sm:$0xff]  }
 0x23d   :  { %2279 = vmatpush1.bf16.msra.mxu0 %v3214_v21  ;;  %2361 = vmatpush1.bf16.msra.mxu1 %v3217_v22  ;;  %v3279_v21 = vld [vmem:[#allocation10 + $0x434] ss:$28 sps:$4 sm:$0xff]   ;;  %v3274_v22 = vld [vmem:[#allocation10 + $0x428] ss:$28 sps:$4 sm:$0xff]  }
 0x23e   :  { %2280 = vmatprep.subr.bf16.mxu0 %v3222_v23  ;;  %2362 = vmatprep.subr.bf16.mxu1 %v3225_v24  ;;  %v3277_v23 = vld [vmem:[#allocation10 + $0x430] ss:$28 sps:$4 sm:$0xff]   ;;  %v3282_v24 = vld [vmem:[#allocation10 + $0x464] ss:$28 sps:$4 sm:$0xff]  }
 0x241   :  { %2281 = vmatpush1.bf16.msra.mxu0 %v3220_v25  ;;  %2363 = vmatpush1.bf16.msra.mxu1 %v3223_v26  ;;  %v3285_v25 = vld [vmem:[#allocation10 + $0x46c] ss:$28 sps:$4 sm:$0xff]   ;;  %v3280_v26 = vld [vmem:[#allocation10 + $0x460] ss:$28 sps:$4 sm:$0xff]  }
 0x242   :  { %2282 = vmatprep.subr.bf16.mxu0 %v3228_v27  ;;  %2364 = vmatprep.subr.bf16.mxu1 %v3231_v28  ;;  %v3283_v27 = vld [vmem:[#allocation10 + $0x468] ss:$28 sps:$4 sm:$0xff]   ;;  %v3288_v28 = vld [vmem:[#allocation10 + $0x49c] ss:$28 sps:$4 sm:$0xff]  }
 0x245   :  { %2283 = vmatpush1.bf16.msra.mxu0 %v3226_v29  ;;  %2365 = vmatpush1.bf16.msra.mxu1 %v3229_v30  ;;  %v3291_v29 = vld [vmem:[#allocation10 + $0x4a4] ss:$28 sps:$4 sm:$0xff]   ;;  %v3286_v30 = vld [vmem:[#allocation10 + $0x498] ss:$28 sps:$4 sm:$0xff]  }
 0x246   :  { %2284 = vmatprep.subr.bf16.mxu0 %v3234_v31  ;;  %2366 = vmatprep.subr.bf16.mxu1 %v3237_v32  ;;  %v3289_v31 = vld [vmem:[#allocation10 + $0x4a0] ss:$28 sps:$4 sm:$0xff]   ;;  %v3294_v32 = vld [vmem:[#allocation10 + $0x4d4] ss:$28 sps:$4 sm:$0xff]  }
 0x249   :  { %2285 = vmatpush1.bf16.msra.mxu0 %v3232_v35  ;;  %2367 = vmatpush1.bf16.msra.mxu1 %v3235_v37  ;;  %v3297_v35 = vld [vmem:[#allocation10 + $0x4dc] ss:$28 sps:$4 sm:$0xff]   ;;  %v3292_v37 = vld [vmem:[#allocation10 + $0x4d0] ss:$28 sps:$4 sm:$0xff]  }
 0x24a   :  { %2286 = vmatprep.subr.bf16.mxu0 %v3240_v38  ;;  %2368 = vmatprep.subr.bf16.mxu1 %v3243_v39  ;;  %v3295_v38 = vld [vmem:[#allocation10 + $0x4d8] ss:$28 sps:$4 sm:$0xff]   ;;  %v3300_v39 = vld [vmem:[#allocation10 + $0x50c] ss:$28 sps:$4 sm:$0xff]  }
 0x24d   :  { %2287 = vmatpush1.bf16.msra.mxu0 %v3238_v40  ;;  %2369 = vmatpush1.bf16.msra.mxu1 %v3241_v41  ;;  %v3303_v40 = vld [vmem:[#allocation10 + $0x514] ss:$28 sps:$4 sm:$0xff]   ;;  %v3298_v41 = vld [vmem:[#allocation10 + $0x508] ss:$28 sps:$4 sm:$0xff]  }
 0x24e   :  { %2288 = vmatprep.subr.bf16.mxu0 %v3246_v42  ;;  %2370 = vmatprep.subr.bf16.mxu1 %v3249_v43  ;;  %v3301_v42 = vld [vmem:[#allocation10 + $0x510] ss:$28 sps:$4 sm:$0xff]   ;;  %v3306_v43 = vld [vmem:[#allocation10 + $0x544] ss:$28 sps:$4 sm:$0xff]  }
 0x251   :  { %2289 = vmatpush1.bf16.msra.mxu0 %v3244_v44  ;;  %2371 = vmatpush1.bf16.msra.mxu1 %v3247_v45  ;;  %v3309_v44 = vld [vmem:[#allocation10 + $0x54c] ss:$28 sps:$4 sm:$0xff]   ;;  %v3304_v45 = vld [vmem:[#allocation10 + $0x540] ss:$28 sps:$4 sm:$0xff]  }
 0x252   :  { %2290 = vmatprep.subr.bf16.mxu0 %v3252_v46  ;;  %2372 = vmatprep.subr.bf16.mxu1 %v3255_v47  ;;  %v3307_v46 = vld [vmem:[#allocation10 + $0x548] ss:$28 sps:$4 sm:$0xff]   ;;  %v3312_v47 = vld [vmem:[#allocation10 + $0x57c] ss:$28 sps:$4 sm:$0xff]  }
 0x255   :  { %2291 = vmatpush1.bf16.msra.mxu0 %v3250_v48  ;;  %2373 = vmatpush1.bf16.msra.mxu1 %v3253_v49  ;;  %v3315_v48 = vld [vmem:[#allocation10 + $0x584] ss:$28 sps:$4 sm:$0xff]   ;;  %v3310_v49 = vld [vmem:[#allocation10 + $0x578] ss:$28 sps:$4 sm:$0xff]  }
 0x256   :  { %2301 = vmatprep.subr.bf16.mxu0 %v3258_v50  ;;  %2383 = vmatprep.subr.bf16.mxu1 %v3261_v51  ;;  %v3313_v50 = vld [vmem:[#allocation10 + $0x580] ss:$28 sps:$4 sm:$0xff]   ;;  %v3318_v51 = vld [vmem:[#allocation10 + $0x5b4] ss:$28 sps:$4 sm:$0xff]  }
 0x2eb   :  { %v759_v57 = vpop.f32.mrb[0].mxu0  ;;  %v3811_v58 = vpop.f32.mrb[8].mxu1 }
 0x2ec   :  { %v760_v59 = vadd.f32 %v759_v57, %v388_v54  ;;  %v761_v60 = vpop.f32.mrb[1].mxu0  ;;  %v802_v61 = vpop.f32.mrb[9].mxu1  ;;  %v3321_v54 = vld [vmem:[#allocation10 + $0x5bc] ss:$28 sps:$4 sm:$0xff]   ;;  %v3324_v57 = vld [vmem:[#allocation10 + $0x5ec] ss:$28 sps:$4 sm:$0xff]  }
 0x2ed   :  { %v762_v62 = vadd.f32 %v761_v60, %v392_v55  ;;  %v803_v63 = vadd.f32 %v802_v61, %v400_v56  ;;  %v763_v0 = vpop.f32.mrb[2].mxu0  ;;  %v804_v1 = vpop.f32.mrb[10].mxu1  ;;  %v3316_v55 = vld [vmem:[#allocation10 + $0x5b0] ss:$28 sps:$4 sm:$0xff]   ;;  %v3319_v56 = vld [vmem:[#allocation10 + $0x5b8] ss:$28 sps:$4 sm:$0xff]  }
 0x2ee   :  { %v807_v2 = vmax.f32 %v760_v59, 0.0  ;;  %v764_v3 = vpop.f32.mrb[3].mxu0  ;;  %v805_v4 = vpop.f32.mrb[11].mxu1  ;;  %v3327_v59 = vld [vmem:[#allocation10 + $0x5f4] ss:$28 sps:$4 sm:$0xff]  }
 0x2ef   :  { %v808_v5 = vmax.f32 %v762_v62, 0.0  ;;  %v810_v6 = vmax.f32 %v803_v63, 0.0  ;;  %v3322_v60 = vld [vmem:[#allocation10 + $0x5e8] ss:$28 sps:$4 sm:$0xff]   ;;  %v3325_v61 = vld [vmem:[#allocation10 + $0x5f0] ss:$28 sps:$4 sm:$0xff]  }
 0x2f0   :  { %v3815_v10 = vpack.c.bf16 %v807_v2, %v807_v2  ;;  %v3330_v62 = vld [vmem:[#allocation10 + $0x624] ss:$28 sps:$4 sm:$0xff]   ;;  %v3333_v63 = vld [vmem:[#allocation10 + $0x62c] ss:$28 sps:$4 sm:$0xff]   ;;  %v395_v2 = vsub.s32 2, %v3785_v33 }
 0x2f1   :  { %v3813_v7 = vpack.c.bf16 %v808_v5, %v808_v5  ;;  %v3819_v13 = vpack.c.bf16 %v810_v6, %v810_v6  ;;  %v3328_v0 = vld [vmem:[#allocation10 + $0x620] ss:$28 sps:$4 sm:$0xff]   ;;  %v3331_v1 = vld [vmem:[#allocation10 + $0x628] ss:$28 sps:$4 sm:$0xff]   ;;  %v3334_v5 = vld [vmem:[#allocation10 + $0x658] ss:$28 sps:$4 sm:$0xff]  }
 0x2f2   :  { %v3336_v3 = vld [vmem:[#allocation10 + $0x65c] ss:$28 sps:$4 sm:$0xff]   ;;  %v3339_v4 = vld [vmem:[#allocation10 + $0x664] ss:$28 sps:$4 sm:$0xff]  }
 0x2f3   :  { %2292 = vmatprep.mubr.bf16.mxu0 %v3813_v7  ;;  %2374 = vmatprep.mubr.bf16.mxu1 %v3813_v7  ;;  %v3337_v6 = vld [vmem:[#allocation10 + $0x660] ss:$28 sps:$4 sm:$0xff]  }
 0x2f4   :  { %2293 = vmatmul.mubr.bf16.vlgmr.msra.gmra.mrb[4].mxu0 %v3815_v10  ;;  %2375 = vmatmul.mubr.bf16.vlgmr.msra.gmra.mrb[12].mxu1 %v3815_v10 }
 0x2f5   :  { %2302 = vmatpush1.bf16.msra.mxu0 %v3256_v8  ;;  %2384 = vmatpush1.bf16.msra.mxu1 %v3259_v9  ;;  %v396_v8 = vrot.slane %v3801_v52, %v395_v2  ;;  %v3342_v9 = vld [vmem:[#allocation10 + $0x694] ss:$28 sps:$4 sm:$0xff]  }
 0x2f6   :  { %2333 = vmatprep.mubr.bf16.mxu0 %v3819_v13  ;;  %2415 = vmatprep.mubr.bf16.mxu1 %v3819_v13  ;;  %v3354_v52 = vld [vmem:[#allocation10 + $0x14] ss:$28 sps:$4 sm:$0xff]  }
 0x2f7   :  { %2303 = vmatprep.subr.bf16.mxu0 %v3264_v11  ;;  %2385 = vmatprep.subr.bf16.mxu1 %v3267_v12  ;;  %v3345_v11 = vld [vmem:[#allocation10 + $0x69c] ss:$28 sps:$4 sm:$0xff]   ;;  %v3340_v12 = vld [vmem:[#allocation10 + $0x690] ss:$28 sps:$4 sm:$0xff]  }
 0x2f9   :  { %2304 = vmatpush1.bf16.msra.mxu0 %v3262_v14  ;;  %2386 = vmatpush1.bf16.msra.mxu1 %v3265_v15  ;;  %v3343_v14 = vld [vmem:[#allocation10 + $0x698] ss:$28 sps:$4 sm:$0xff]   ;;  %v801_v15 = vadd.f32 %v3811_v58, %v396_v8  ;;  %v3410_v8 = vld [vmem:[#allocation10 + $0x600] ss:$28 sps:$4 sm:$0xff]  }
 0x2fa   :  { %2305 = vmatprep.subr.bf16.mxu0 %v3270_v16  ;;  %2387 = vmatprep.subr.bf16.mxu1 %v3273_v17  ;;  %v3348_v16 = vld [vmem:[#allocation10 + $0x6cc] ss:$28 sps:$4 sm:$0xff]   ;;  %v3351_v17 = vld [vmem:[#allocation10 + $0x6d4] ss:$28 sps:$4 sm:$0xff]  }
 0x2fb   :  { %v3356_v58 = vld [vmem:[#allocation10 + $0x18] ss:$28 sps:$4 sm:$0xff]  }
 0x2fd   :  { %2306 = vmatpush1.bf16.msra.mxu0 %v3268_v18  ;;  %2388 = vmatpush1.bf16.msra.mxu1 %v3271_v19  ;;  %v3346_v18 = vld [vmem:[#allocation10 + $0x6c8] ss:$28 sps:$4 sm:$0xff]   ;;  %v3349_v19 = vld [vmem:[#allocation10 + $0x6d0] ss:$28 sps:$4 sm:$0xff]  }
 0x2fe   :  { %2307 = vmatprep.subr.bf16.mxu0 %v3276_v20  ;;  %2389 = vmatprep.subr.bf16.mxu1 %v3279_v21  ;;  %v809_v20 = vmax.f32 %v801_v15, 0.0  ;;  %v3355_v21 = vld [vmem:[#allocation10 + $0x1d8] ss:$28 sps:$4 sm:$0xff]   ;;  %v3412_v15 = vld [vmem:[#allocation10 + $0x2b0] ss:$28 sps:$4 sm:$0xff]  }
 0x301   :  { %2308 = vmatpush1.bf16.msra.mxu0 %v3274_v22  ;;  %2390 = vmatpush1.bf16.msra.mxu1 %v3277_v23  ;;  %v3352_v22 = vld [vmem:[#allocation10 + $0x10] ss:$28 sps:$4 sm:$0xff]   ;;  %v3830_v23 = vpack.c.bf16 %v809_v20, %v809_v20 }
 0x302   :  { %2309 = vmatprep.subr.bf16.mxu0 %v3282_v24  ;;  %2391 = vmatprep.subr.bf16.mxu1 %v3285_v25  ;;  %v3359_v24 = vld [vmem:[#allocation10 + $0x4c] ss:$28 sps:$4 sm:$0xff]  }
 0x303   :  { %v3360_v25 = vld [vmem:[#allocation10 + $0x210] ss:$28 sps:$4 sm:$0xff]  }
 0x304   :  { %v3421_v20 = vld [vmem:[#allocation10 + $0x4b0] ss:$28 sps:$4 sm:$0xff]  }
 0x305   :  { %2310 = vmatpush1.bf16.msra.mxu0 %v3280_v26  ;;  %2392 = vmatpush1.bf16.msra.mxu1 %v3283_v27  ;;  %v3357_v26 = vld [vmem:[#allocation10 + $0x48] ss:$28 sps:$4 sm:$0xff]   ;;  %v3361_v27 = vld [vmem:[#allocation10 + $0x50] ss:$28 sps:$4 sm:$0xff]  }
 0x306   :  { %2311 = vmatprep.subr.bf16.mxu0 %v3288_v28  ;;  %2393 = vmatprep.subr.bf16.mxu1 %v3291_v29  ;;  %v3364_v28 = vld [vmem:[#allocation10 + $0x84] ss:$28 sps:$4 sm:$0xff]  }
 0x307   :  { %v3365_v29 = vld [vmem:[#allocation10 + $0x248] ss:$28 sps:$4 sm:$0xff]  }
 0x309   :  { %2312 = vmatpush1.bf16.msra.mxu0 %v3286_v30  ;;  %2394 = vmatpush1.bf16.msra.mxu1 %v3289_v31  ;;  %v3362_v30 = vld [vmem:[#allocation10 + $0x80] ss:$28 sps:$4 sm:$0xff]   ;;  %v3366_v31 = vld [vmem:[#allocation10 + $0x88] ss:$28 sps:$4 sm:$0xff]  }
 0x30a   :  { %2313 = vmatprep.subr.bf16.mxu0 %v3294_v32  ;;  %2395 = vmatprep.subr.bf16.mxu1 %v3297_v35  ;;  %v3369_v32 = vld [vmem:[#allocation10 + $0xbc] ss:$28 sps:$4 sm:$0xff]  }
 0x30b   :  { %v3370_v35 = vld [vmem:[#allocation10 + $0x280] ss:$28 sps:$4 sm:$0xff]  }
 0x30d   :  { %2314 = vmatpush1.bf16.msra.mxu0 %v3292_v37  ;;  %2396 = vmatpush1.bf16.msra.mxu1 %v3295_v38  ;;  %v3367_v37 = vld [vmem:[#allocation10 + $0xb8] ss:$28 sps:$4 sm:$0xff]   ;;  %v3371_v38 = vld [vmem:[#allocation10 + $0xc0] ss:$28 sps:$4 sm:$0xff]  }
 0x30e   :  { %2315 = vmatprep.subr.bf16.mxu0 %v3300_v39  ;;  %2397 = vmatprep.subr.bf16.mxu1 %v3303_v40  ;;  %v3374_v39 = vld [vmem:[#allocation10 + $0xf4] ss:$28 sps:$4 sm:$0xff]  }
 0x30f   :  { %v3372_v40 = vld [vmem:[#allocation10 + $0xf0] ss:$28 sps:$4 sm:$0xff]  }
 0x311   :  { %2316 = vmatpush1.bf16.msra.mxu0 %v3298_v41  ;;  %2398 = vmatpush1.bf16.msra.mxu1 %v3301_v42  ;;  %v3376_v41 = vld [vmem:[#allocation10 + $0xf8] ss:$28 sps:$4 sm:$0xff]   ;;  %v3379_v42 = vld [vmem:[#allocation10 + $0x12c] ss:$28 sps:$4 sm:$0xff]  }
 0x312   :  { %2317 = vmatprep.subr.bf16.mxu0 %v3306_v43  ;;  %2399 = vmatprep.subr.bf16.mxu1 %v3309_v44  ;;  %v3380_v43 = vld [vmem:[#allocation10 + $0x2f0] ss:$28 sps:$4 sm:$0xff]   ;;  %v3377_v44 = vld [vmem:[#allocation10 + $0x128] ss:$28 sps:$4 sm:$0xff]  }
 0x315   :  { %2318 = vmatpush1.bf16.msra.mxu0 %v3304_v45  ;;  %2400 = vmatpush1.bf16.msra.mxu1 %v3307_v46  ;;  %v3381_v45 = vld [vmem:[#allocation10 + $0x130] ss:$28 sps:$4 sm:$0xff]   ;;  %v3384_v46 = vld [vmem:[#allocation10 + $0x164] ss:$28 sps:$4 sm:$0xff]  }
 0x316   :  { %2319 = vmatprep.subr.bf16.mxu0 %v3312_v47  ;;  %2401 = vmatprep.subr.bf16.mxu1 %v3315_v48  ;;  %v3385_v47 = vld [vmem:[#allocation10 + $0x328] ss:$28 sps:$4 sm:$0xff]   ;;  %v3382_v48 = vld [vmem:[#allocation10 + $0x160] ss:$28 sps:$4 sm:$0xff]  }
 0x319   :  { %2320 = vmatpush1.bf16.msra.mxu0 %v3310_v49  ;;  %2402 = vmatpush1.bf16.msra.mxu1 %v3313_v50  ;;  %v3386_v49 = vld [vmem:[#allocation10 + $0x168] ss:$28 sps:$4 sm:$0xff]   ;;  %v3389_v50 = vld [vmem:[#allocation10 + $0x19c] ss:$28 sps:$4 sm:$0xff]  }
 0x31a   :  { %2321 = vmatprep.subr.bf16.mxu0 %v3318_v51  ;;  %2403 = vmatprep.subr.bf16.mxu1 %v3321_v54  ;;  %v3390_v51 = vld [vmem:[#allocation10 + $0x360] ss:$28 sps:$4 sm:$0xff]   ;;  %v3387_v54 = vld [vmem:[#allocation10 + $0x198] ss:$28 sps:$4 sm:$0xff]  }
 0x31d   :  { %2322 = vmatpush1.bf16.msra.mxu0 %v3316_v55  ;;  %2404 = vmatpush1.bf16.msra.mxu1 %v3319_v56  ;;  %v3391_v55 = vld [vmem:[#allocation10 + $0x1a0] ss:$28 sps:$4 sm:$0xff]   ;;  %v3394_v56 = vld [vmem:[#allocation10 + $0x1d4] ss:$28 sps:$4 sm:$0xff]  }
 0x31e   :  { %2323 = vmatprep.subr.bf16.mxu0 %v3324_v57  ;;  %2405 = vmatprep.subr.bf16.mxu1 %v3327_v59  ;;  %v3395_v57 = vld [vmem:[#allocation10 + $0x558] ss:$28 sps:$4 sm:$0xff]   ;;  %v3392_v59 = vld [vmem:[#allocation10 + $0x1d0] ss:$28 sps:$4 sm:$0xff]  }
 0x321   :  { %2324 = vmatpush1.bf16.msra.mxu0 %v3322_v60  ;;  %2406 = vmatpush1.bf16.msra.mxu1 %v3325_v61  ;;  %v3396_v60 = vld [vmem:[#allocation10 + $0x398] ss:$28 sps:$4 sm:$0xff]   ;;  %v3399_v61 = vld [vmem:[#allocation10 + $0x20c] ss:$28 sps:$4 sm:$0xff]  }
 0x322   :  { %2325 = vmatprep.subr.bf16.mxu0 %v3330_v62  ;;  %2407 = vmatprep.subr.bf16.mxu1 %v3333_v63  ;;  %v3400_v62 = vld [vmem:[#allocation10 + $0x590] ss:$28 sps:$4 sm:$0xff]   ;;  %v3397_v63 = vld [vmem:[#allocation10 + $0x208] ss:$28 sps:$4 sm:$0xff]  }
 0x325   :  { %2326 = vmatpush1.bf16.msra.mxu0 %v3328_v0  ;;  %2408 = vmatpush1.bf16.msra.mxu1 %v3331_v1  ;;  %v3401_v0 = vld [vmem:[#allocation10 + $0x3d0] ss:$28 sps:$4 sm:$0xff]   ;;  %v3404_v1 = vld [vmem:[#allocation10 + $0x244] ss:$28 sps:$4 sm:$0xff]  }
 0x326   :  { %2327 = vmatprep.subr.bf16.mxu0 %v3336_v3  ;;  %2409 = vmatprep.subr.bf16.mxu1 %v3339_v4  ;;  %v3405_v3 = vld [vmem:[#allocation10 + $0x5c8] ss:$28 sps:$4 sm:$0xff]   ;;  %v3402_v4 = vld [vmem:[#allocation10 + $0x240] ss:$28 sps:$4 sm:$0xff]  }
 0x329   :  { %2328 = vmatpush1.bf16.msra.mxu0 %v3334_v5  ;;  %2410 = vmatpush1.bf16.msra.mxu1 %v3337_v6  ;;  %v3406_v5 = vld [vmem:[#allocation10 + $0x408] ss:$28 sps:$4 sm:$0xff]   ;;  %v3409_v6 = vld [vmem:[#allocation10 + $0x27c] ss:$28 sps:$4 sm:$0xff]  }
 0x32a   :  { %2329 = vmatprep.subr.bf16.mxu0 %v3342_v9  ;;  %2411 = vmatprep.subr.bf16.mxu1 %v3345_v11  ;;  %v3407_v9 = vld [vmem:[#allocation10 + $0x278] ss:$28 sps:$4 sm:$0xff]   ;;  %v3411_v11 = vld [vmem:[#allocation10 + $0x440] ss:$28 sps:$4 sm:$0xff]  }
 0x32d   :  { %2330 = vmatpush1.bf16.msra.mxu0 %v3340_v12  ;;  %2412 = vmatpush1.bf16.msra.mxu1 %v3343_v14  ;;  %v3414_v12 = vld [vmem:[#allocation10 + $0x2b4] ss:$28 sps:$4 sm:$0xff]  }
 0x32e   :  { %2331 = vmatprep.subr.bf16.mxu0 %v3348_v16  ;;  %2413 = vmatprep.subr.bf16.mxu1 %v3351_v17  ;;  %v3415_v14 = vld [vmem:[#allocation10 + $0x638] ss:$28 sps:$4 sm:$0xff]   ;;  %v3419_v17 = vld [vmem:[#allocation10 + $0x2ec] ss:$28 sps:$4 sm:$0xff]  }
 0x32f   :  { %v3416_v16 = vld [vmem:[#allocation10 + $0x478] ss:$28 sps:$4 sm:$0xff]  }
 0x331   :  { %2332 = vmatpush1.bf16.msra.mxu0 %v3346_v18  ;;  %2414 = vmatpush1.bf16.msra.mxu1 %v3349_v19  ;;  %v3420_v18 = vld [vmem:[#allocation10 + $0x670] ss:$28 sps:$4 sm:$0xff]   ;;  %v3417_v19 = vld [vmem:[#allocation10 + $0x2e8] ss:$28 sps:$4 sm:$0xff]  }
 0x332   :  { %2424 = vmatprep.subr.bf16.mxu0 %v3354_v52  ;;  %2954 = vmatprep.subr.bf16.mxu1 %v3355_v21  ;;  %v3424_v52 = vld [vmem:[#allocation10 + $0x324] ss:$28 sps:$4 sm:$0xff]  }
 0x333   :  { %v3425_v21 = vld [vmem:[#allocation10 + $0x6a8] ss:$28 sps:$4 sm:$0xff]  }
 0x334   :  { %2334 = vmatmul.mubr.bf16.vlgmr.msra.gmra.mrb[4].mxu0 %v3830_v23  ;;  %2416 = vmatmul.mubr.bf16.vlgmr.msra.gmra.mrb[12].mxu1 %v3830_v23 }
 0x335   :  { %2425 = vmatpush1.bf16.msra.mxu0 %v3352_v22  ;;  %2456 = vmatprep.mubr.bf16.mxu0 %v3813_v7  ;;  %v3422_v22 = vld [vmem:[#allocation10 + $0x320] ss:$28 sps:$4 sm:$0xff]  }
 0x336   :  { %2955 = vmatpush3.bf16.msra.mxu1 %v3356_v58  ;;  %2538 = vmatprep.mubr.bf16.mxu1 %v3813_v7  ;;  %v3375_v7 = vld [vmem:[#allocation10 + $0x2b8] ss:$28 sps:$4 sm:$0xff]   ;;  %v3426_v58 = vld [vmem:[#allocation10 + $0x4e8] ss:$28 sps:$4 sm:$0xff]  }
 0x337   :  { %2426 = vmatprep.subr.bf16.mxu0 %v3359_v24  ;;  %2956 = vmatprep.subr.bf16.mxu1 %v3360_v25  ;;  %v3429_v24 = vld [vmem:[#allocation10 + $0x35c] ss:$28 sps:$4 sm:$0xff]  }
 0x338   :  { %v3430_v25 = vld [vmem:[#allocation10 + $0x6e0] ss:$28 sps:$4 sm:$0xff]  }
 0x339   :  { %2427 = vmatpush1.bf16.msra.mxu0 %v3357_v26  ;;  %v3427_v26 = vld [vmem:[#allocation10 + $0x358] ss:$28 sps:$4 sm:$0xff]  }
 0x33a   :  { %2957 = vmatpush3.bf16.msra.mxu1 %v3361_v27  ;;  %2428 = vmatprep.subr.bf16.mxu0 %v3364_v28  ;;  %v3431_v27 = vld [vmem:[#allocation10 + $0x520] ss:$28 sps:$4 sm:$0xff]   ;;  %v3434_v28 = vld [vmem:[#allocation10 + $0x394] ss:$28 sps:$4 sm:$0xff]  }
 0x33b   :  { %2958 = vmatprep.subr.bf16.mxu1 %v3365_v29  ;;  %v3432_v29 = vld [vmem:[#allocation10 + $0x390] ss:$28 sps:$4 sm:$0xff]  }
 0x33d   :  { %2429 = vmatpush1.bf16.msra.mxu0 %v3362_v30  ;;  %v3437_v30 = vld [vmem:[#allocation10 + $0x3cc] ss:$28 sps:$4 sm:$0xff]  }
 0x33e   :  { %2959 = vmatpush3.bf16.msra.mxu1 %v3366_v31  ;;  %2430 = vmatprep.subr.bf16.mxu0 %v3369_v32  ;;  %v3435_v31 = vld [vmem:[#allocation10 + $0x3c8] ss:$28 sps:$4 sm:$0xff]  }
 0x33f   :  { %2960 = vmatprep.subr.bf16.mxu1 %v3370_v35  ;;  %v3440_v32 = vld [vmem:[#allocation10 + $0x404] ss:$28 sps:$4 sm:$0xff]  }
 0x340   :  { %v3438_v35 = vld [vmem:[#allocation10 + $0x400] ss:$28 sps:$4 sm:$0xff]  }
 0x341   :  { %2431 = vmatpush1.bf16.msra.mxu0 %v3367_v37  ;;  %v3443_v37 = vld [vmem:[#allocation10 + $0x43c] ss:$28 sps:$4 sm:$0xff]  }
 0x342   :  { %2961 = vmatpush3.bf16.msra.mxu1 %v3371_v38  ;;  %2432 = vmatprep.subr.bf16.mxu0 %v3374_v39  ;;  %v3441_v38 = vld [vmem:[#allocation10 + $0x438] ss:$28 sps:$4 sm:$0xff]  }
 0x343   :  { %2962 = vmatprep.subr.bf16.mxu1 %v3375_v7  ;;  %v3446_v39 = vld [vmem:[#allocation10 + $0x474] ss:$28 sps:$4 sm:$0xff]  }
 0x344   :  { %v3444_v7 = vld [vmem:[#allocation10 + $0x470] ss:$28 sps:$4 sm:$0xff]  }
 0x345   :  { %2433 = vmatpush1.bf16.msra.mxu0 %v3372_v40  ;;  %v3447_v40 = vld [vmem:[#allocation10 + $0x4a8] ss:$28 sps:$4 sm:$0xff]  }
 0x346   :  { %2963 = vmatpush3.bf16.msra.mxu1 %v3376_v41  ;;  %2434 = vmatprep.subr.bf16.mxu0 %v3379_v42  ;;  %v3452_v41 = vld [vmem:[#allocation10 + $0x4e4] ss:$28 sps:$4 sm:$0xff]   ;;  %v3455_v42 = vld [vmem:[#allocation10 + $0x51c] ss:$28 sps:$4 sm:$0xff]  }
 0x347   :  { %2964 = vmatprep.subr.bf16.mxu1 %v3380_v43  ;;  %v3453_v43 = vld [vmem:[#allocation10 + $0x518] ss:$28 sps:$4 sm:$0xff]  }
 0x349   :  { %2435 = vmatpush1.bf16.msra.mxu0 %v3377_v44  ;;  %v3458_v44 = vld [vmem:[#allocation10 + $0x554] ss:$28 sps:$4 sm:$0xff]  }
 0x34a   :  { %2965 = vmatpush3.bf16.msra.mxu1 %v3381_v45  ;;  %2436 = vmatprep.subr.bf16.mxu0 %v3384_v46  ;;  %v3456_v45 = vld [vmem:[#allocation10 + $0x550] ss:$28 sps:$4 sm:$0xff]  }
 0x34b   :  { %2966 = vmatprep.subr.bf16.mxu1 %v3385_v47  ;;  %v3461_v46 = vld [vmem:[#allocation10 + $0x58c] ss:$28 sps:$4 sm:$0xff]  }
 0x34c   :  { %v3459_v47 = vld [vmem:[#allocation10 + $0x588] ss:$28 sps:$4 sm:$0xff]  }
 0x34d   :  { %2437 = vmatpush1.bf16.msra.mxu0 %v3382_v48  ;;  %v3464_v48 = vld [vmem:[#allocation10 + $0x5c4] ss:$28 sps:$4 sm:$0xff]  }
 0x34e   :  { %2967 = vmatpush3.bf16.msra.mxu1 %v3386_v49  ;;  %2438 = vmatprep.subr.bf16.mxu0 %v3389_v50  ;;  %v3462_v49 = vld [vmem:[#allocation10 + $0x5c0] ss:$28 sps:$4 sm:$0xff]  }
 0x34f   :  { %2968 = vmatprep.subr.bf16.mxu1 %v3390_v51  ;;  %v3467_v50 = vld [vmem:[#allocation10 + $0x5fc] ss:$28 sps:$4 sm:$0xff]  }
 0x350   :  { %v3465_v51 = vld [vmem:[#allocation10 + $0x5f8] ss:$28 sps:$4 sm:$0xff]  }
 0x351   :  { %2439 = vmatpush1.bf16.msra.mxu0 %v3387_v54  ;;  %v3470_v54 = vld [vmem:[#allocation10 + $0x634] ss:$28 sps:$4 sm:$0xff]  }
 0x352   :  { %2969 = vmatpush3.bf16.msra.mxu1 %v3391_v55  ;;  %2440 = vmatprep.subr.bf16.mxu0 %v3394_v56  ;;  %v3468_v55 = vld [vmem:[#allocation10 + $0x630] ss:$28 sps:$4 sm:$0xff]  }
 0x353   :  { %2976 = vmatprep.subr.bf16.mxu1 %v3395_v57  ;;  %v3473_v56 = vld [vmem:[#allocation10 + $0x66c] ss:$28 sps:$4 sm:$0xff]  }
 0x354   :  { %v3471_v57 = vld [vmem:[#allocation10 + $0x668] ss:$28 sps:$4 sm:$0xff]  }
 0x355   :  { %2539 = vmatmul.mubr.bf16.vlgmr.msra.gmra.mrb[16].mxu1 %v3815_v10  ;;  %2441 = vmatpush1.bf16.msra.mxu0 %v3392_v59  ;;  %v3476_v59 = vld [vmem:[#allocation10 + $0x6a4] ss:$28 sps:$4 sm:$0xff]  }
 0x356   :  { %2977 = vmatpush3.bf16.msra.mxu1 %v3396_v60  ;;  %2578 = vmatprep.mubr.bf16.mxu1 %v3819_v13  ;;  %v3474_v60 = vld [vmem:[#allocation10 + $0x6a0] ss:$28 sps:$4 sm:$0xff]  }
 0x357   :  { %2442 = vmatprep.subr.bf16.mxu0 %v3399_v61  ;;  %2978 = vmatprep.subr.bf16.mxu1 %v3400_v62  ;;  %v3479_v61 = vld [vmem:[#allocation10 + $0x6dc] ss:$28 sps:$4 sm:$0xff]  }
 0x358   :  { %v3477_v62 = vld [vmem:[#allocation10 + $0x6d8] ss:$28 sps:$4 sm:$0xff]  }
 0x359   :  { %2443 = vmatpush1.bf16.msra.mxu0 %v3397_v63  ;;  %v3845_v63 = vld [vmem:[%s3883_s8] sm:$0xff]  ;;  %s3664_s8 = smov [#allocation11]  }
 0x35a   :  { %2979 = vmatpush3.bf16.msra.mxu1 %v3401_v0  ;;  %2444 = vmatprep.subr.bf16.mxu0 %v3404_v1  ;;  %v1076_v0 = vrot.slane %v3845_v63, %v3788_v34  ;;  %v1084_v1 = vrot.slane %v3845_v63, %v395_v2  ;;  %s2634_s1 = sshll.u32 %s3664_s8, 4  ;;  %s2635_s1 = int_to_ptr.vmem [resolvable:$true] %s2634_s1 }
 0x35b   :  { %2980 = vmatprep.subr.bf16.mxu1 %v3405_v3  ;;  %v1080_v3 = vrot.slane %v3845_v63, %v3794_v36  ;;  %s3618_s10 = scalar_lea.vmem %s2635_s1, 896  ;;  %p3623_p13 = scmp.lt.s32.totalorder %s2635_s1, %s2635_s1 }
 0x35c   :  { %p3619_p12 = scmp.ne.s32.totalorder %s2635_s1, %s3618_s10  ;;  %p3624_p0 = scmp.lt.s32.totalorder %s3618_s10, %s3618_s10 }
 0x35d   :  { %2445 = vmatpush1.bf16.msra.mxu0 %v3402_v4  ;;  %v1088_v4 = vrot.slane %v3845_v63, %v399_v53 }
 0x35e   :  { %2981 = vmatpush3.bf16.msra.mxu1 %v3406_v5  ;;  %2446 = vmatprep.subr.bf16.mxu0 %v3409_v6  ;;  %p3625_p1 = por %p3624_p0, %p3623_p13 }
 0x35f   :  { %2982 = vmatprep.subr.bf16.mxu1 %v3410_v8 }
 0x360   :  { %p3626_p2 = pnand %p3625_p1, %p3619_p12 }
 0x361   :  { %2447 = vmatpush1.bf16.msra.mxu0 %v3407_v9 }
 0x362   :  { %2983 = vmatpush3.bf16.msra.mxu1 %v3411_v11  ;;  %2448 = vmatprep.subr.bf16.mxu0 %v3414_v12 }
 0x363   :  { %2984 = vmatprep.subr.bf16.mxu1 %v3415_v14 }
 0x365   :  { %2449 = vmatpush1.bf16.msra.mxu0 %v3412_v15 }
 0x366   :  { %2985 = vmatpush3.bf16.msra.mxu1 %v3416_v16  ;;  %2450 = vmatprep.subr.bf16.mxu0 %v3419_v17 }
 0x367   :  { %2986 = vmatprep.subr.bf16.mxu1 %v3420_v18 }
 0x369   :  { %2451 = vmatpush1.bf16.msra.mxu0 %v3417_v19 }
 0x36a   :  { %2987 = vmatpush3.bf16.msra.mxu1 %v3421_v20  ;;  %2452 = vmatprep.subr.bf16.mxu0 %v3424_v52 }
 0x36b   :  { %2988 = vmatprep.subr.bf16.mxu1 %v3425_v21 }
 0x36d   :  { %2453 = vmatpush1.bf16.msra.mxu0 %v3422_v22 }
 0x36e   :  { %2989 = vmatpush3.bf16.msra.mxu1 %v3426_v58  ;;  %2454 = vmatprep.subr.bf16.mxu0 %v3429_v24 }
 0x36f   :  { %2990 = vmatprep.subr.bf16.mxu1 %v3430_v25 }
 0x371   :  { %2455 = vmatpush1.bf16.msra.mxu0 %v3427_v26 }
 0x372   :  { %2991 = vmatpush3.bf16.msra.mxu1 %v3431_v27  ;;  %2465 = vmatprep.subr.bf16.mxu0 %v3434_v28 }
 0x374   :  { %2457 = vmatmul.mubr.bf16.vlgmr.msra.gmra.mrb[8].mxu0 %v3815_v10  ;;  %v3449_v10 = vld [vmem:[#allocation10 + $0x4ac] ss:$28 sps:$4 sm:$0xff]  }
 0x375   :  { %2579 = vmatmul.mubr.bf16.vlgmr.msra.gmra.mrb[20].mxu1 %v3830_v23  ;;  %2466 = vmatpush1.bf16.msra.mxu0 %v3432_v29 }
 0x376   :  { %2497 = vmatprep.mubr.bf16.mxu0 %v3819_v13  ;;  %2467 = vmatprep.subr.bf16.mxu0 %v3437_v30  ;;  %v3450_v13 = vld [vmem:[#allocation10 + $0x4e0] ss:$28 sps:$4 sm:$0xff]  }
 0x379   :  { %2468 = vmatpush1.bf16.msra.mxu0 %v3435_v31 }
 0x37a   :  { %2469 = vmatprep.subr.bf16.mxu0 %v3440_v32 }
 0x37d   :  { %2470 = vmatpush1.bf16.msra.mxu0 %v3438_v35 }
 0x37e   :  { %2471 = vmatprep.subr.bf16.mxu0 %v3443_v37 }
 0x381   :  { %2472 = vmatpush1.bf16.msra.mxu0 %v3441_v38 }
 0x382   :  { %2473 = vmatprep.subr.bf16.mxu0 %v3446_v39 }
 0x385   :  { %2474 = vmatpush1.bf16.msra.mxu0 %v3444_v7 }
 0x386   :  { %2475 = vmatprep.subr.bf16.mxu0 %v3449_v10 }
 0x389   :  { %2476 = vmatpush1.bf16.msra.mxu0 %v3447_v40  ;;  %v1099_v40 = vsub.s32 6, %v3785_v33 }
 0x38a   :  { %2477 = vmatprep.subr.bf16.mxu0 %v3452_v41 }
 0x38b   :  { %v1100_v41 = vrot.slane %v3845_v63, %v1099_v40 }
 0x38d   :  { %2478 = vmatpush1.bf16.msra.mxu0 %v3450_v13 }
 0x38e   :  { %2479 = vmatprep.subr.bf16.mxu0 %v3455_v42 }
 0x391   :  { %2480 = vmatpush1.bf16.msra.mxu0 %v3453_v43 }
 0x392   :  { %2481 = vmatprep.subr.bf16.mxu0 %v3458_v44 }
 0x395   :  { %2482 = vmatpush1.bf16.msra.mxu0 %v3456_v45 }
 0x396   :  { %2483 = vmatprep.subr.bf16.mxu0 %v3461_v46 }
 0x399   :  { %2484 = vmatpush1.bf16.msra.mxu0 %v3459_v47 }
 0x39a   :  { %2485 = vmatprep.subr.bf16.mxu0 %v3464_v48 }
 0x39d   :  { %2486 = vmatpush1.bf16.msra.mxu0 %v3462_v49 }
 0x39e   :  { %2487 = vmatprep.subr.bf16.mxu0 %v3467_v50 }
 0x3a1   :  { %2488 = vmatpush1.bf16.msra.mxu0 %v3465_v51 }
 0x3a2   :  { %2489 = vmatprep.subr.bf16.mxu0 %v3470_v54 }
 0x3a5   :  { %2490 = vmatpush1.bf16.msra.mxu0 %v3468_v55  ;;  %v1091_v55 = vsub.s32 4, %v3785_v33 }
 0x3a6   :  { %2491 = vmatprep.subr.bf16.mxu0 %v3473_v56  ;;  %v1095_v56 = vsub.s32 5, %v3785_v33 }
 0x3a9   :  { %2492 = vmatpush1.bf16.msra.mxu0 %v3471_v57  ;;  %v1092_v57 = vrot.slane %v3845_v63, %v1091_v55 }
 0x3aa   :  { %2493 = vmatprep.subr.bf16.mxu0 %v3476_v59  ;;  %v1096_v59 = vrot.slane %v3845_v63, %v1095_v56 }
 0x3ad   :  { %2494 = vmatpush1.bf16.msra.mxu0 %v3474_v60 }
 0x3ae   :  { %2495 = vmatprep.subr.bf16.mxu0 %v3479_v61 }
 0x3b1   :  { %2496 = vmatpush1.bf16.msra.mxu0 %v3477_v62 }
 0x3b4   :  { %2498 = vmatmul.mubr.bf16.vlgmr.msra.gmra.mrb[8].mxu0 %v3830_v23 }
 0x407   :  { %v2335_v23 = vpop.f32.mrb[4].mxu0  ;;  %v2417_v5 = vpop.f32.mrb[12].mxu1 }
 0x408   :  { %v3004_v6 = vadd.f32 %v2335_v23, %v1076_v0  ;;  %v3006_v8 = vadd.f32 %v2417_v5, %v1084_v1  ;;  %v2337_v9 = vpop.f32.mrb[5].mxu0  ;;  %v2419_v11 = vpop.f32.mrb[13].mxu1 }
 0x409   :  { %v3005_v12 = vadd.f32 %v2337_v9, %v1080_v3  ;;  %v3007_v14 = vadd.f32 %v2419_v11, %v1088_v4  ;;  %v2339_v34 = vpop.f32.mrb[6].mxu0  ;;  %v2421_v15 = vpop.f32.mrb[14].mxu1 }
 0x40a   :  { %v2586_v16 = vsub.f32 0.0, %v3004_v6  ;;  %v2588_v17 = vsub.f32 0.0, %v3006_v8  ;;  %v2340_v2 = vpop.f32.mrb[7].mxu0  ;;  %v2422_v18 = vpop.f32.mrb[15].mxu1 }
 0x40b   :  { %v2587_v19 = vsub.f32 0.0, %v3005_v12  ;;  %v2589_v36 = vsub.f32 0.0, %v3007_v14 }
 0x40c   :  { %v2593_v20 = vmul.f32 1.442695, %v2586_v16  ;;  %v2597_v52 = vmul.f32 1.442695, %v2588_v17 }
 0x40d   :  { %v2595_v21 = vmul.f32 1.442695, %v2587_v19  ;;  %v2599_v53 = vmul.f32 1.442695, %v2589_v36 }
 0x40e   :  { %3480 = vpow2.f32 %v2593_v20 }
 0x40f   :  { %3482 = vpow2.f32 %v2597_v52 }
 0x410   :  { %3484 = vpow2.f32 %v2595_v21 }
 0x411   :  { %3486 = vpow2.f32 %v2599_v53 }
 0x418   :  { %v3481_v22 = vpop.eup %3480 }
 0x419   :  { %v3483_v58 = vpop.eup %3482  ;;  %v2607_v24 = vadd.f32 1.0, %v3481_v22 }
 0x41a   :  { %v3485_v25 = vpop.eup %3484  ;;  %v2609_v26 = vadd.f32 1.0, %v3483_v58 }
 0x41b   :  { %v3487_v27 = vpop.eup %3486  ;;  %3488 = vrcp.f32 %v2607_v24  ;;  %v2608_v28 = vadd.f32 1.0, %v3485_v25 }
 0x41c   :  { %3490 = vrcp.f32 %v2609_v26  ;;  %v2610_v29 = vadd.f32 1.0, %v3487_v27 }
 0x41d   :  { %3492 = vrcp.f32 %v2608_v28 }
 0x41e   :  { %3494 = vrcp.f32 %v2610_v29 }
 0x425   :  { %v3489_v30 = vpop.eup %3488 }
 0x426   :  { %v3491_v31 = vpop.eup %3490  ;;  %2621 = vst [vmem:[#allocation11] sm:$0xff] %v3489_v30 }
 0x427   :  { %v3493_v32 = vpop.eup %3492  ;;  %2623 = vst [vmem:[#allocation11 + $0x10] sm:$0xff] %v3491_v31 }
 0x428   :  { %v3495_v35 = vpop.eup %3494  ;;  %2622 = vst [vmem:[#allocation11 + $0x8] sm:$0xff] %v3493_v32  ;;  %v2970_v37 = vpop.f32.mrb[16].mxu1 }
 0x429   :  { %2624 = vst [vmem:[#allocation11 + $0x18] sm:$0xff] %v3495_v35  ;;  %v2971_v38 = vpop.f32.mrb[17].mxu1 }
 0x42a   :  { %v2972_v39 = vadd.f32 %v2971_v38, %v2970_v37  ;;  %v2973_v7 = vpop.f32.mrb[18].mxu1 }
 0x42b   :  { %v2974_v10 = vpop.f32.mrb[19].mxu1 }
 0x42c   :  { %v2541_v43 = vadd.f32 %v2972_v39, %v1100_v41 }
 0x448   :  { %v2992_v13 = vpop.f32.mrb[20].mxu1 }
 0x449   :  { %v2993_v42 = vpop.f32.mrb[21].mxu1 }
 0x44a   :  { %v2994_v44 = vadd.f32 %v2993_v42, %v2992_v13  ;;  %v2995_v45 = vpop.f32.mrb[22].mxu1 }
 0x44b   :  { %v2996_v46 = vpop.f32.mrb[23].mxu1 }
 0x44c   :  { %v2581_v47 = vadd.f32 %v2994_v44, %v2541_v43 }
 0x44e   :  { %v2592_v48 = vsub.f32 0.0, %v2581_v47 }
 0x450   :  { %v2605_v49 = vmul.f32 1.442695, %v2592_v48 }
 0x452   :  { %3496 = vpow2.f32 %v2605_v49 }
 0x45c   :  { %v3497_v50 = vpop.eup %3496 }
 0x45d   :  { %v2613_v51 = vadd.f32 1.0, %v3497_v50 }
 0x45f   :  { %3498 = vrcp.f32 %v2613_v51 }
 0x469   :  { %v3499_v54 = vpop.eup %3498 }
 0x46a   :  { %2627 = vst [vmem:[#allocation11 + $0x30] sm:$0xff] %v3499_v54 }
 0x487   :  { %v2499_v60 = vpop.f32.mrb[8].mxu0 }
 0x488   :  { %v3008_v61 = vadd.f32 %v2499_v60, %v1092_v57  ;;  %v2501_v62 = vpop.f32.mrb[9].mxu0 }
 0x489   :  { %v3009_v0 = vadd.f32 %v2501_v62, %v1096_v59  ;;  %v2503_v1 = vpop.f32.mrb[10].mxu0 }
 0x48a   :  { %v2590_v3 = vsub.f32 0.0, %v3008_v61  ;;  %v2504_v4 = vpop.f32.mrb[11].mxu0 }
 0x48b   :  { %v2591_v23 = vsub.f32 0.0, %v3009_v0 }
 0x48c   :  { %v2601_v5 = vmul.f32 1.442695, %v2590_v3 }
 0x48d   :  { %v2603_v6 = vmul.f32 1.442695, %v2591_v23 }
 0x48e   :  { %3500 = vpow2.f32 %v2601_v5 }
 0x48f   :  { %3502 = vpow2.f32 %v2603_v6 }
 0x498   :  { %v3501_v8 = vpop.eup %3500 }
 0x499   :  { %v3503_v9 = vpop.eup %3502  ;;  %v2611_v11 = vadd.f32 1.0, %v3501_v8 }
 0x49a   :  { %v2612_v33 = vadd.f32 1.0, %v3503_v9 }
 0x49b   :  { %3504 = vrcp.f32 %v2611_v11 }
 0x49c   :  { %3506 = vrcp.f32 %v2612_v33 }
 0x4a5   :  { %v3505_v63 = vpop.eup %3504 }
 0x4a6   :  { %v3507_v12 = vpop.eup %3506  ;;  %2625 = vst [vmem:[#allocation11 + $0x20] sm:$0xff] %v3505_v63 }
 0x4a7   :  { %2626 = vst [vmem:[#allocation11 + $0x28] sm:$0xff] %v3507_v12 }
 0x4a8   :  { %3629 = shalt.err (!%p3626_p2)
}
 0x4a9   :  { %s3630_s14 = scalar_lea.hbm %s3884_s9, 896 }
 0x4aa   :  { %p3631_p3 = scmp.ne.s32.totalorder %s3884_s9, %s3630_s14  ;;  %p3634_p4 = scmp.lt.u32.totalorder %s3630_s14, %s3884_s9 }
 0x4ac   :  { %p3636_p5 = pnand %p3634_p4, %p3631_p3 }
 0x4ae   :  { %3639 = shalt.err (!%p3636_p5)
}
 0x4af   :  { %2637 = dma.vmem_to_hbm [thread:$0]  %s2635_s1, 896, %s3884_s9, [#allocation4]  }
 0x4b0   :  { %3646 = dma.done.wait [#allocation4], 896  }
 0x4b1   :  { %3647 = vsyncadd [#allocation4], 4294966400 }
 0x4b2   :  { %2641 = vsyncpa [#allocation3], 1 }
 0x4b3   :  { %2642 = vsyncpa [#allocation6], 1 }
 0x4b4   :  { %2643 = vsyncpa [#allocation9], 1 }
 0x4b5   :  { %2644 = vsyncpa [#allocation4], 1 }

</bundles_post_ra>
